<compile_context>
chip_gen: v5e
topology: v5e:2x2
jax: 0.10.0
libtpu: 0.0.40
codegen_flags: <defaults>
</compile_context>

<pallas_src>
import functools
import numpy as np
import jax
import jax.numpy as jnp
from jax import lax
from jax.experimental import pallas as pl
from jax.experimental.pallas import tpu as pltpu

_NEG_SLOPE = 0.01  # nn.LeakyReLU default, as used inside OpenGait's set blocks.


def _set_block_conv_kernel(x_ref, w_ref, m_ref, o_ref, *, width):
    """One grid step = one block of F frames.

    x_ref: [F, Cin, D]     flattened (h*w) frames, no padding
    w_ref: [Cout, 9*Cin]   3x3 weights, tap-major (dy outer, dx inner) then channel
    m_ref: [9*Cin, D]      border-validity mask per (tap, channel) row
    o_ref: [F, Cout, D]
    """
    n_frames, cout, D = o_ref.shape
    cin = x_ref.shape[1]

    x = x_ref[...]                                       # [F, Cin, D]

    # im2col: 9 rolled copies of the whole frame block, concatenated along the channel
    # axis -> [F, 9*Cin, D].  pltpu.roll wraps within each frame's own D lanes; the
    # border mask zeroes exactly those wrapped / off-image contributions.
    taps = [(dy, dx) for dy in (-1, 0, 1) for dx in (-1, 0, 1)]
    cols = []
    for dy, dx in taps:
        shift = dy * width + dx                          # static python int
        if shift % D == 0:
            cols.append(x)
        else:
            cols.append(pltpu.roll(x, shift=(-shift) % D, axis=2))
    stack = jnp.concatenate(cols, axis=1)                # [F, 9*Cin, D]
    stack = stack * m_ref[...][None, :, :]               # single masked pass

    w2d = w_ref[...]                                     # [Cout, 9*Cin] (~4 vregs, safe to hold)

    # One MXU contraction per frame (K = 9*Cin); each store is a full-lane [Cout, D] tile.
    for f in range(n_frames):
        acc = jnp.dot(w2d, stack[f], preferred_element_type=jnp.float32)   # [Cout, D] f32
        y = jnp.maximum(acc, _NEG_SLOPE * acc)           # LeakyReLU, 2 VPU ops
        o_ref[f] = y.astype(o_ref.dtype)


def set_block_conv(x, weight, *, frames_per_step=32):
    """SetBlockWrapper(BasicConv2d(3x3, pad=1, bias=False) + LeakyReLU(0.01)).

    x:      [n, s, c_in, h, w]
    weight: [c_out, c_in, 3, 3]  (torch OIHW layout; cast to x.dtype for the MXU)
    returns [n, s, c_out, h, w]  (same dtype as x)
    """
    n, s, cin, h, w = (int(d) for d in x.shape)
    cout = int(weight.shape[0])
    assert tuple(weight.shape) == (cout, cin, 3, 3)
    B, D = n * s, h * w

    # Pick frames/step F.  Prefer a divisor of B (no output un-pad slice => no extra
    # HBM pass over the largest tensor); keep >= 2 grid steps when possible so the
    # "parallel" grid axis can shard across v7x's two TensorCores.
    target = max(1, min(int(frames_per_step), B))
    if B >= 2:
        target = min(target, max(1, B // 2))
    F = 1
    for cand in range(target, 0, -1):
        if B % cand == 0:
            F = cand
            break
    if F < max(1, target // 4):      # awkward B (e.g. prime): fall back to frame padding
        F = target
        Bp = pl.cdiv(B, F) * F
    else:
        Bp = B

    # [n, s, c, h, w] -> [B, c, D]: pure reshape, no transpose, no lane pad.
    xf = x.reshape(B, cin, D)
    if Bp != B:
        xf = jnp.pad(xf, ((0, Bp - B), (0, 0), (0, 0)))
    G = Bp // F

    # Weights OIHW -> [Cout, 9*Cin], tap-major (ky, kx) then input channel.
    w2d = jnp.transpose(weight, (0, 2, 3, 1)).reshape(cout, 9 * cin).astype(x.dtype)

    # Border-validity mask per (tap, channel) row over the flattened h*w axis (host-built).
    ys, xs_ = np.divmod(np.arange(D), w)
    taps = [(dy, dx) for dy in (-1, 0, 1) for dx in (-1, 0, 1)]
    m = np.stack(
        [((ys + dy >= 0) & (ys + dy < h) & (xs_ + dx >= 0) & (xs_ + dx < w))
         for (dy, dx) in taps]).astype(np.float32)                  # [9, D]
    mask = jnp.asarray(np.repeat(m, cin, axis=0), dtype=x.dtype)    # [9*Cin, D]

    kernel = functools.partial(_set_block_conv_kernel, width=w)
    out = pl.pallas_call(
        kernel,
        out_shape=jax.ShapeDtypeStruct((Bp, cout, D), x.dtype),
        grid=(G,),
        in_specs=[
            pl.BlockSpec((F, cin, D), lambda g: (g, 0, 0)),
            pl.BlockSpec((cout, 9 * cin), lambda g: (0, 0)),
            pl.BlockSpec((9 * cin, D), lambda g: (0, 0)),
        ],
        out_specs=pl.BlockSpec((F, cout, D), lambda g: (g, 0, 0)),
        compiler_params=pltpu.CompilerParams(
            dimension_semantics=("parallel",),   # frame groups are independent (v7x: 2 TCs)
        ),
    )(xf, w2d, mask)

    if Bp != B:
        out = out[:B]
    # [B, Cout, D] -> [n, s, Cout, h, w] (pure reshape).
    return out.reshape(n, s, cout, h, w)


if __name__ == "__main__":
    key = jax.random.PRNGKey(0)
    n, s, c_in, h, w = 2, 8, 4, 16, 16
    c_out = 32
    kx, kw = jax.random.split(key)
    x = jax.random.normal(kx, (n, s, c_in, h, w), dtype=jnp.float32)
    weight = jax.random.normal(kw, (c_out, c_in, 3, 3), dtype=jnp.float32) * 0.2

    out = jax.block_until_ready(set_block_conv(x, weight))
    assert out.shape == (n, s, c_out, h, w), out.shape
    assert out.dtype == x.dtype

    # Pure-JAX reference of SetBlockWrapper semantics: frame-wise conv + LeakyReLU,
    # applied on x.view(n*s, c, h, w) and reshaped back to [n, s, ...].
    xf = x.reshape(n * s, c_in, h, w)
    ref = lax.conv_general_dilated(
        xf, weight, window_strides=(1, 1), padding="SAME",
        dimension_numbers=("NCHW", "OIHW", "NCHW"))
    ref = jnp.where(ref > 0, ref, _NEG_SLOPE * ref).reshape(n, s, c_out, h, w)

    # Tolerance covers MXU/XLA f32 matmul-pass precision differences on TPU.
    np.testing.assert_allclose(np.asarray(out), np.asarray(ref), rtol=2e-2, atol=2e-2)
    print("KERNEL_OK")
</pallas_src>

<mosaic_0001>
module attributes {stable_mosaic.version = 11 : i64} {
  func.func @_set_block_conv_kernel(%arg0: i32, %arg1: memref<8x4x256xf32, #tpu.memory_space<vmem>>, %arg2: memref<32x36xf32, #tpu.memory_space<vmem>>, %arg3: memref<36x256xf32, #tpu.memory_space<vmem>>, %arg4: memref<8x32x256xf32, #tpu.memory_space<vmem>>) attributes {dimension_semantics = [#tpu.dimension_semantics<parallel>], iteration_bounds = array<i64: 2>, scalar_prefetch = 0 : i64, scratch_operands = 0 : i64, tpu.core_type = #tpu.core_type<tc>, window_params = [{transform_indices = @transform_0, window_bounds = array<i64: 8, 4, 256>}, {pipeline_mode = #tpu.pipeline_mode<synchronous>, transform_indices = @transform_1, window_bounds = array<i64: 32, 36>}, {pipeline_mode = #tpu.pipeline_mode<synchronous>, transform_indices = @transform_2, window_bounds = array<i64: 36, 256>}, {transform_indices = @transform_3, window_bounds = array<i64: 8, 32, 256>}]} {
    %c0 = arith.constant 0 : index
    %c0_0 = arith.constant 0 : index
    %c0_1 = arith.constant 0 : index
    %0 = vector.load %arg1[%c0, %c0_0, %c0_1] : memref<8x4x256xf32, #tpu.memory_space<vmem>>, vector<8x4x256xf32>
    %c17_i32 = arith.constant 17 : i32
    %1 = tpu.dynamic_rotate %0 by %c17_i32 dim 2 : vector<8x4x256xf32>, i32 -> vector<8x4x256xf32>
    %c16_i32 = arith.constant 16 : i32
    %2 = tpu.dynamic_rotate %0 by %c16_i32 dim 2 : vector<8x4x256xf32>, i32 -> vector<8x4x256xf32>
    %c15_i32 = arith.constant 15 : i32
    %3 = tpu.dynamic_rotate %0 by %c15_i32 dim 2 : vector<8x4x256xf32>, i32 -> vector<8x4x256xf32>
    %c1_i32 = arith.constant 1 : i32
    %4 = tpu.dynamic_rotate %0 by %c1_i32 dim 2 : vector<8x4x256xf32>, i32 -> vector<8x4x256xf32>
    %c255_i32 = arith.constant 255 : i32
    %5 = tpu.dynamic_rotate %0 by %c255_i32 dim 2 : vector<8x4x256xf32>, i32 -> vector<8x4x256xf32>
    %c241_i32 = arith.constant 241 : i32
    %6 = tpu.dynamic_rotate %0 by %c241_i32 dim 2 : vector<8x4x256xf32>, i32 -> vector<8x4x256xf32>
    %c240_i32 = arith.constant 240 : i32
    %7 = tpu.dynamic_rotate %0 by %c240_i32 dim 2 : vector<8x4x256xf32>, i32 -> vector<8x4x256xf32>
    %c239_i32 = arith.constant 239 : i32
    %8 = tpu.dynamic_rotate %0 by %c239_i32 dim 2 : vector<8x4x256xf32>, i32 -> vector<8x4x256xf32>
    %9 = tpu.concatenate %1, %2, %3, %4, %0, %5, %6, %7, %8 in 1 : vector<8x4x256xf32>, vector<8x4x256xf32>, vector<8x4x256xf32>, vector<8x4x256xf32>, vector<8x4x256xf32>, vector<8x4x256xf32>, vector<8x4x256xf32>, vector<8x4x256xf32>, vector<8x4x256xf32> -> vector<8x36x256xf32>
    %c0_2 = arith.constant 0 : index
    %c0_3 = arith.constant 0 : index
    %10 = vector.load %arg3[%c0_2, %c0_3] : memref<36x256xf32, #tpu.memory_space<vmem>>, vector<36x256xf32>
    %11 = vector.shape_cast %10 : vector<36x256xf32> to vector<1x36x256xf32>
    %12 = vector.broadcast %11 : vector<1x36x256xf32> to vector<8x36x256xf32>
    %13 = arith.mulf %9, %12 : vector<8x36x256xf32>
    %c0_4 = arith.constant 0 : index
    %c0_5 = arith.constant 0 : index
    %14 = vector.load %arg2[%c0_4, %c0_5] : memref<32x36xf32, #tpu.memory_space<vmem>>, vector<32x36xf32>
    %15 = vector.extract_strided_slice %13 {offsets = [0, 0, 0], sizes = [1, 36, 256], strides = [1, 1, 1]} : vector<8x36x256xf32> to vector<1x36x256xf32>
    %16 = vector.shape_cast %15 : vector<1x36x256xf32> to vector<36x256xf32>
    %cst = arith.constant dense<0.000000e+00> : vector<32x256xf32>
    %17 = tpu.matmul %14, %16, %cst {dimension_numbers = #tpu.dot_dimension_numbers<[1], [0], [0], [1], [0, 0, 1, 1], [], []>} : vector<32x36xf32>, vector<36x256xf32>, vector<32x256xf32> -> vector<32x256xf32>
    %cst_6 = arith.constant 0.00999999977 : f32
    %18 = vector.broadcast %cst_6 : f32 to vector<32x256xf32>
    %19 = arith.mulf %18, %17 : vector<32x256xf32>
    %20 = arith.maximumf %17, %19 : vector<32x256xf32>
    %c0_7 = arith.constant 0 : index
    %c0_8 = arith.constant 0 : index
    %c0_9 = arith.constant 0 : index
    %21 = vector.load %arg4[%c0_7, %c0_8, %c0_9] : memref<8x32x256xf32, #tpu.memory_space<vmem>>, vector<1x32x256xf32>
    %22 = vector.shape_cast %21 : vector<1x32x256xf32> to vector<32x256xf32>
    %23 = vector.shape_cast %20 : vector<32x256xf32> to vector<1x32x256xf32>
    tpu.vector_store %arg4[%c0_7, %c0_8, %c0_9], %23 {strides = array<i32>} : memref<8x32x256xf32, #tpu.memory_space<vmem>>, vector<1x32x256xf32>,
    %24 = vector.extract_strided_slice %13 {offsets = [1, 0, 0], sizes = [1, 36, 256], strides = [1, 1, 1]} : vector<8x36x256xf32> to vector<1x36x256xf32>
    %25 = vector.shape_cast %24 : vector<1x36x256xf32> to vector<36x256xf32>
    %cst_10 = arith.constant dense<0.000000e+00> : vector<32x256xf32>
    %26 = tpu.matmul %14, %25, %cst_10 {dimension_numbers = #tpu.dot_dimension_numbers<[1], [0], [0], [1], [0, 0, 1, 1], [], []>} : vector<32x36xf32>, vector<36x256xf32>, vector<32x256xf32> -> vector<32x256xf32>
    %cst_11 = arith.constant 0.00999999977 : f32
    %27 = vector.broadcast %cst_11 : f32 to vector<32x256xf32>
    %28 = arith.mulf %27, %26 : vector<32x256xf32>
    %29 = arith.maximumf %26, %28 : vector<32x256xf32>
    %c1 = arith.constant 1 : index
    %c0_12 = arith.constant 0 : index
    %c0_13 = arith.constant 0 : index
    %30 = vector.load %arg4[%c1, %c0_12, %c0_13] : memref<8x32x256xf32, #tpu.memory_space<vmem>>, vector<1x32x256xf32>
    %31 = vector.shape_cast %30 : vector<1x32x256xf32> to vector<32x256xf32>
    %32 = vector.shape_cast %29 : vector<32x256xf32> to vector<1x32x256xf32>
    tpu.vector_store %arg4[%c1, %c0_12, %c0_13], %32 {strides = array<i32>} : memref<8x32x256xf32, #tpu.memory_space<vmem>>, vector<1x32x256xf32>,
    %33 = vector.extract_strided_slice %13 {offsets = [2, 0, 0], sizes = [1, 36, 256], strides = [1, 1, 1]} : vector<8x36x256xf32> to vector<1x36x256xf32>
    %34 = vector.shape_cast %33 : vector<1x36x256xf32> to vector<36x256xf32>
    %cst_14 = arith.constant dense<0.000000e+00> : vector<32x256xf32>
    %35 = tpu.matmul %14, %34, %cst_14 {dimension_numbers = #tpu.dot_dimension_numbers<[1], [0], [0], [1], [0, 0, 1, 1], [], []>} : vector<32x36xf32>, vector<36x256xf32>, vector<32x256xf32> -> vector<32x256xf32>
    %cst_15 = arith.constant 0.00999999977 : f32
    %36 = vector.broadcast %cst_15 : f32 to vector<32x256xf32>
    %37 = arith.mulf %36, %35 : vector<32x256xf32>
    %38 = arith.maximumf %35, %37 : vector<32x256xf32>
    %c2 = arith.constant 2 : index
    %c0_16 = arith.constant 0 : index
    %c0_17 = arith.constant 0 : index
    %39 = vector.load %arg4[%c2, %c0_16, %c0_17] : memref<8x32x256xf32, #tpu.memory_space<vmem>>, vector<1x32x256xf32>
    %40 = vector.shape_cast %39 : vector<1x32x256xf32> to vector<32x256xf32>
    %41 = vector.shape_cast %38 : vector<32x256xf32> to vector<1x32x256xf32>
    tpu.vector_store %arg4[%c2, %c0_16, %c0_17], %41 {strides = array<i32>} : memref<8x32x256xf32, #tpu.memory_space<vmem>>, vector<1x32x256xf32>,
    %42 = vector.extract_strided_slice %13 {offsets = [3, 0, 0], sizes = [1, 36, 256], strides = [1, 1, 1]} : vector<8x36x256xf32> to vector<1x36x256xf32>
    %43 = vector.shape_cast %42 : vector<1x36x256xf32> to vector<36x256xf32>
    %cst_18 = arith.constant dense<0.000000e+00> : vector<32x256xf32>
    %44 = tpu.matmul %14, %43, %cst_18 {dimension_numbers = #tpu.dot_dimension_numbers<[1], [0], [0], [1], [0, 0, 1, 1], [], []>} : vector<32x36xf32>, vector<36x256xf32>, vector<32x256xf32> -> vector<32x256xf32>
    %cst_19 = arith.constant 0.00999999977 : f32
    %45 = vector.broadcast %cst_19 : f32 to vector<32x256xf32>
    %46 = arith.mulf %45, %44 : vector<32x256xf32>
    %47 = arith.maximumf %44, %46 : vector<32x256xf32>
    %c3 = arith.constant 3 : index
    %c0_20 = arith.constant 0 : index
    %c0_21 = arith.constant 0 : index
    %48 = vector.load %arg4[%c3, %c0_20, %c0_21] : memref<8x32x256xf32, #tpu.memory_space<vmem>>, vector<1x32x256xf32>
    %49 = vector.shape_cast %48 : vector<1x32x256xf32> to vector<32x256xf32>
    %50 = vector.shape_cast %47 : vector<32x256xf32> to vector<1x32x256xf32>
    tpu.vector_store %arg4[%c3, %c0_20, %c0_21], %50 {strides = array<i32>} : memref<8x32x256xf32, #tpu.memory_space<vmem>>, vector<1x32x256xf32>,
    %51 = vector.extract_strided_slice %13 {offsets = [4, 0, 0], sizes = [1, 36, 256], strides = [1, 1, 1]} : vector<8x36x256xf32> to vector<1x36x256xf32>
    %52 = vector.shape_cast %51 : vector<1x36x256xf32> to vector<36x256xf32>
    %cst_22 = arith.constant dense<0.000000e+00> : vector<32x256xf32>
    %53 = tpu.matmul %14, %52, %cst_22 {dimension_numbers = #tpu.dot_dimension_numbers<[1], [0], [0], [1], [0, 0, 1, 1], [], []>} : vector<32x36xf32>, vector<36x256xf32>, vector<32x256xf32> -> vector<32x256xf32>
    %cst_23 = arith.constant 0.00999999977 : f32
    %54 = vector.broadcast %cst_23 : f32 to vector<32x256xf32>
    %55 = arith.mulf %54, %53 : vector<32x256xf32>
    %56 = arith.maximumf %53, %55 : vector<32x256xf32>
    %c4 = arith.constant 4 : index
    %c0_24 = arith.constant 0 : index
    %c0_25 = arith.constant 0 : index
    %57 = vector.load %arg4[%c4, %c0_24, %c0_25] : memref<8x32x256xf32, #tpu.memory_space<vmem>>, vector<1x32x256xf32>
    %58 = vector.shape_cast %57 : vector<1x32x256xf32> to vector<32x256xf32>
    %59 = vector.shape_cast %56 : vector<32x256xf32> to vector<1x32x256xf32>
    tpu.vector_store %arg4[%c4, %c0_24, %c0_25], %59 {strides = array<i32>} : memref<8x32x256xf32, #tpu.memory_space<vmem>>, vector<1x32x256xf32>,
    %60 = vector.extract_strided_slice %13 {offsets = [5, 0, 0], sizes = [1, 36, 256], strides = [1, 1, 1]} : vector<8x36x256xf32> to vector<1x36x256xf32>
    %61 = vector.shape_cast %60 : vector<1x36x256xf32> to vector<36x256xf32>
    %cst_26 = arith.constant dense<0.000000e+00> : vector<32x256xf32>
    %62 = tpu.matmul %14, %61, %cst_26 {dimension_numbers = #tpu.dot_dimension_numbers<[1], [0], [0], [1], [0, 0, 1, 1], [], []>} : vector<32x36xf32>, vector<36x256xf32>, vector<32x256xf32> -> vector<32x256xf32>
    %cst_27 = arith.constant 0.00999999977 : f32
    %63 = vector.broadcast %cst_27 : f32 to vector<32x256xf32>
    %64 = arith.mulf %63, %62 : vector<32x256xf32>
    %65 = arith.maximumf %62, %64 : vector<32x256xf32>
    %c5 = arith.constant 5 : index
    %c0_28 = arith.constant 0 : index
    %c0_29 = arith.constant 0 : index
    %66 = vector.load %arg4[%c5, %c0_28, %c0_29] : memref<8x32x256xf32, #tpu.memory_space<vmem>>, vector<1x32x256xf32>
    %67 = vector.shape_cast %66 : vector<1x32x256xf32> to vector<32x256xf32>
    %68 = vector.shape_cast %65 : vector<32x256xf32> to vector<1x32x256xf32>
    tpu.vector_store %arg4[%c5, %c0_28, %c0_29], %68 {strides = array<i32>} : memref<8x32x256xf32, #tpu.memory_space<vmem>>, vector<1x32x256xf32>,
    %69 = vector.extract_strided_slice %13 {offsets = [6, 0, 0], sizes = [1, 36, 256], strides = [1, 1, 1]} : vector<8x36x256xf32> to vector<1x36x256xf32>
    %70 = vector.shape_cast %69 : vector<1x36x256xf32> to vector<36x256xf32>
    %cst_30 = arith.constant dense<0.000000e+00> : vector<32x256xf32>
    %71 = tpu.matmul %14, %70, %cst_30 {dimension_numbers = #tpu.dot_dimension_numbers<[1], [0], [0], [1], [0, 0, 1, 1], [], []>} : vector<32x36xf32>, vector<36x256xf32>, vector<32x256xf32> -> vector<32x256xf32>
    %cst_31 = arith.constant 0.00999999977 : f32
    %72 = vector.broadcast %cst_31 : f32 to vector<32x256xf32>
    %73 = arith.mulf %72, %71 : vector<32x256xf32>
    %74 = arith.maximumf %71, %73 : vector<32x256xf32>
    %c6 = arith.constant 6 : index
    %c0_32 = arith.constant 0 : index
    %c0_33 = arith.constant 0 : index
    %75 = vector.load %arg4[%c6, %c0_32, %c0_33] : memref<8x32x256xf32, #tpu.memory_space<vmem>>, vector<1x32x256xf32>
    %76 = vector.shape_cast %75 : vector<1x32x256xf32> to vector<32x256xf32>
    %77 = vector.shape_cast %74 : vector<32x256xf32> to vector<1x32x256xf32>
    tpu.vector_store %arg4[%c6, %c0_32, %c0_33], %77 {strides = array<i32>} : memref<8x32x256xf32, #tpu.memory_space<vmem>>, vector<1x32x256xf32>,
    %78 = vector.extract_strided_slice %13 {offsets = [7, 0, 0], sizes = [1, 36, 256], strides = [1, 1, 1]} : vector<8x36x256xf32> to vector<1x36x256xf32>
    %79 = vector.shape_cast %78 : vector<1x36x256xf32> to vector<36x256xf32>
    %cst_34 = arith.constant dense<0.000000e+00> : vector<32x256xf32>
    %80 = tpu.matmul %14, %79, %cst_34 {dimension_numbers = #tpu.dot_dimension_numbers<[1], [0], [0], [1], [0, 0, 1, 1], [], []>} : vector<32x36xf32>, vector<36x256xf32>, vector<32x256xf32> -> vector<32x256xf32>
    %cst_35 = arith.constant 0.00999999977 : f32
    %81 = vector.broadcast %cst_35 : f32 to vector<32x256xf32>
    %82 = arith.mulf %81, %80 : vector<32x256xf32>
    %83 = arith.maximumf %80, %82 : vector<32x256xf32>
    %c7 = arith.constant 7 : index
    %c0_36 = arith.constant 0 : index
    %c0_37 = arith.constant 0 : index
    %84 = vector.load %arg4[%c7, %c0_36, %c0_37] : memref<8x32x256xf32, #tpu.memory_space<vmem>>, vector<1x32x256xf32>
    %85 = vector.shape_cast %84 : vector<1x32x256xf32> to vector<32x256xf32>
    %86 = vector.shape_cast %83 : vector<32x256xf32> to vector<1x32x256xf32>
    tpu.vector_store %arg4[%c7, %c0_36, %c0_37], %86 {strides = array<i32>} : memref<8x32x256xf32, #tpu.memory_space<vmem>>, vector<1x32x256xf32>,
    return
  }
  func.func @transform_0(%arg0: i32) -> (i32, i32, i32) {
    %c0_i32 = arith.constant 0 : i32
    %c0_i32_0 = arith.constant 0 : i32
    %c0_i32_1 = arith.constant 0 : i32
    return %arg0, %c0_i32, %c0_i32_0 : i32, i32, i32
  }
  func.func @transform_1(%arg0: i32) -> (i32, i32) {
    %c0_i32 = arith.constant 0 : i32
    %c0_i32_0 = arith.constant 0 : i32
    %c0_i32_1 = arith.constant 0 : i32
    return %c0_i32, %c0_i32_0 : i32, i32
  }
  func.func @transform_2(%arg0: i32) -> (i32, i32) {
    %c0_i32 = arith.constant 0 : i32
    %c0_i32_0 = arith.constant 0 : i32
    %c0_i32_1 = arith.constant 0 : i32
    return %c0_i32, %c0_i32_0 : i32, i32
  }
  func.func @transform_3(%arg0: i32) -> (i32, i32, i32) {
    %c0_i32 = arith.constant 0 : i32
    %c0_i32_0 = arith.constant 0 : i32
    %c0_i32_1 = arith.constant 0 : i32
    return %arg0, %c0_i32, %c0_i32_0 : i32, i32, i32
  }
}

</mosaic_0001>

<bundles_post_ra>
// kernel: tpu_custom_call.1
= control target key start
LH: loop header
LB: loop body
LE: loop exit
PB: predicated region body
PF: predicated region fallthrough
CT: control target
= control target key end

     0   :  { %8 = vsyncpa [#allocation3], 0  ;;  %s4082_s0 = inlined_call_operand.hbm [shape: f32[16,4,256], index: 0, kind: input, shape index: {}]   ;;  %s4083_s1 = inlined_call_operand.hbm [shape: f32[32,36], index: 1, kind: input, shape index: {}]   ;;  %s4084_s2 = inlined_call_operand.hbm [shape: f32[36,256], index: 2, kind: input, shape index: {}]   ;;  %s4085_s3 = inlined_call_operand.hbm [shape: f32[16,32,256], index: 3, kind: output, shape index: {}]  }
   0x1   :  { %10 = vsyncpa [#allocation3 + $0x1], 0 }
   0x2   :  { %11 = vsyncpa [#allocation6], 0 }
   0x3   :  { %12 = vsyncpa [#allocation4], 0 }
   0x4   :  { %14 = vsyncpa [#allocation4 + $0x1], 0  ;;  %s2647_s12 = smov 0   ;;  %s2649_s13 = smov 0  }
   0x5   :  { %s2651_s14 = smov 0   ;;  %s2653_s15 = smov 0  }
   0x6 LB: > { %s2668_s16 = sadd.s32 4294967295, %s2610_s15   ;;  %s2208_s17 = sadd.s32 4294967294, %s2610_s15   ;;  %s2610_s15 = sphi %s2653_s15, %s4175_s15   ;;  %s2606_s14 = sphi %s2651_s14, %s4174_s14   ;;  %s2602_s13 = sphi %s2649_s13, %s4173_s13   ;;  %s2598_s12 = sphi %s2647_s12, %s4172_s12  }
   0x7   : > { %p40_p0 = scmp.ne.s32.totalorder %s2602_s13, %s2598_s12  ;;  %p41_p1 = scmp.eq.s32.totalorder %s2668_s16, 0 }
   0x8   : > { %p106_p2 = scmp.eq.s32.totalorder %s2668_s16, 1  ;;  %p112_p3 = scmp.eq.s32.totalorder %s2208_s17, 1 }
   0x9   : > { %p2677_p4 = por %p41_p1, %p40_p0  ;;  %p2209_p5 = scmp.ge.s32.totalorder %s2610_s15, 1 }
   0xa   : > { %p2682_p6 = por %p112_p3, %p40_p0  ;;  %p119_p7 = scmp.lt.s32.totalorder %s2610_s15, 3 }
   0xb   : > { %s130_s22 = sshll.u32 %s4083_s1, 4  ;;  %s2612_s24 = smov [#allocation5]   ;;  %s131_s22 = int_to_ptr.hbm [resolvable:$true] %s130_s22 }
   0xc   : > { %p2690_p8 = pnand %p2209_p5, %p119_p7  ;;  %s132_s25 = sshll.u32 %s2612_s24, 4  ;;  %s133_s25 = int_to_ptr.vmem [resolvable:$true] %s132_s25 }
   0xd   : > { %s144_s28 = sshll.u32 %s4084_s2, 4  ;;  %s2613_s29 = smov 128   ;;  %s145_s28 = int_to_ptr.hbm [resolvable:$true] %s144_s28 }
   0xe   : > { %p2380_p9 = pneg %p2690_p8  ;;  %s2614_s30 = smov 8  }
   0xf   : > { %s2615_s4 = smov [#allocation7]   ;;  %s2616_s6 = smov 256  }
  0x10   : > { %p2381_p10 = pnand %p2380_p9, %p41_p1  ;;  %s146_s5 = sshll.u32 %s2615_s4, 4  ;;  %s147_s5 = int_to_ptr.vmem [resolvable:$true] %s146_s5 }
  0x11   : > { %s2617_s7 = smov 16   ;;  %s2706_s8 = sadd.s32 1, %s2610_s15  }
  0x12   : > { %2383 = dma.hbm_to_vmem [thread:$0]  (!%p2381_p10), %s131_s22, 512, %s133_s25, [#allocation6], %s2613_s29, %s2613_s29, %s2614_s30  }
  0x13   : > { %2386 = dma.hbm_to_vmem [thread:$0]  (!%p2381_p10), %s145_s28, 1280, %s147_s5, [#allocation6], %s2616_s6, %s2616_s6, %s2617_s7  }
  0x14   : > { %s24_s9 = ssub.s32 %s2610_s15, %s2706_s8  ;;  %s27_s10 = sadd.s32 1, %s2606_s14 }
  0x15   : > { %p25_p12 = scmp.eq.s32.totalorder %s24_s9, 0  ;;  %p34_p13 = scmp.ne.s32.totalorder %s2606_s14, %s2602_s13 }
  0x16   : > { %p35_p0 = scmp.eq.s32.totalorder %s2610_s15, 0  ;;  %p2397_p7 = scmp.lt.s32.totalorder %s2610_s15, 2 }
  0x17   : > { %s2715_s11 = scalar_select %p25_p12, %s2606_s14, %s27_s10  }
  0x18   : > { %p36_p3 = por %p35_p0, %p34_p13  ;;  %p2719_p5 = por %p106_p2, %p34_p13 }
  0x19   : > { %s160_s20 = sand.u32 1, %s2606_s14   ;;  %s2365_s22 = sshll.u32 %s2610_s15, 6 }
  0x1a   : > { %s2213_s21 = sshll.u32 %s160_s20, 6  ;;  %s170_s26 = scalar_lea.hbm %s4082_s0, %s2365_s22 }
  0x1b   : > { %s164_s27 = scalar_lea.vmem [#allocation2], %s2213_s21  ;;  %s171_s4 = sshll.u32 %s170_s26, 4  ;;  %s172_s4 = int_to_ptr.hbm [resolvable:$true] %s171_s4 }
  0x1c   : > { %s173_s28 = sshll.u32 %s164_s27, 4  ;;  %p2729_p9 = pnand %p2397_p7, %p36_p3  ;;  %s174_s28 = int_to_ptr.vmem [resolvable:$true] %s173_s28 }
  0x1d   : > { %s161_s6 = scalar_lea.sflag [#allocation3], %s160_s20  ;;  %s2510_s7 = sshra.s32 %s172_s4, 4  ;;  %s2511_s7 = int_to_ptr.hbm [resolvable:$true] %s2510_s7 }
  0x1e   : > { %s2512_s9 = scalar_lea.hbm %s2511_s7, 64  ;;  %p2514_p10 = pneg %p2729_p9 }
  0x1f   : > { %p2513_p2 = scmp.ne.s32.totalorder %s2511_s7, %s2512_s9  ;;  %s2517_s22 = scalar_lea.hbm %s4082_s0, 128 }
  0x20   : > { %p2518_p0 = scmp.lt.s32.totalorder %s2511_s7, %s4082_s0  ;;  %p2519_p3 = scmp.lt.s32.totalorder %s2517_s22, %s2512_s9 }
  0x21   : > { %p2515_p12 = pnand %p2514_p10, %p2513_p2 }
  0x22   : > { %p2520_p7 = por %p2519_p3, %p2518_p0 }
  0x23   : > { %p2516_p13 = pneg %p2515_p12 }
  0x25   : > { %p2521_p11 = pnand %p2520_p7, %p2516_p13 }
  0x27   : > { %2524 = shalt.err (!%p2521_p11)
}
  0x28   : > { %2390 = dma.hbm_to_vmem [thread:$0]  (!%p2729_p9), %s172_s4, 1024, %s174_s28, %s161_s6, %s2613_s29, %s2613_s29, %s2614_s30  }
  0x29   : > { %185 = sbr.rel (%p2690_p8) target bundleno = 688 (0x2b0), region = 32 }
  0x2e   : > { %s2749_s20 = sand.u32 1, %s2602_s13  }
  0x2f   : > { %s2218_s26 = sshll.u32 %s2749_s20, 6  ;;  %s188_s27 = scalar_lea.sflag [#allocation3], %s2749_s20 }
  0x30   : > { %s191_s7 = scalar_lea.vmem [#allocation2], %s2218_s26 }
  0x31   : > { %2585 = dma.done.wait (%p2677_p4), %s188_s27, 1024  }
  0x32   : > { %2587 = vsyncadd (%p2677_p4), %s188_s27, 4294966272 }
  0x33   : > { %2589 = dma.done.wait (%p41_p1), [#allocation6], 1792  }
  0x34   : > { %2591 = vsyncadd (%p41_p1), [#allocation6], 4294965504  ;;  %v2761_v0 = vld [vmem:[%s191_s7 + $0x10] sm:$0xff]  ;;  %v2763_v1 = vld [vmem:[%s191_s7] sm:$0xff]  ;;  %s2618_s18 = smov 17   ;;  %s2619_s23 = smov 16  }
  0x35   : > { %v2765_v2 = vld [vmem:[%s191_s7 + $0x18] sm:$0xff]  ;;  %251 = vst [vmem:[#allocation1 + $0x20] ss:$2 sm:$0xff] %v2761_v0  ;;  %v2768_v3 = vld [vmem:[%s191_s7 + $0x8] sm:$0xff]  ;;  %v2773_v5 = vld [vmem:[%s191_s7 + $0x20] sm:$0xff]  ;;  %s2620_s29 = smov 1  }
  0x36   : > { %243 = vst [vmem:[#allocation1] ss:$2 sm:$0xff] %v2763_v1  ;;  %v2775_v6 = vld [vmem:[%s191_s7 + $0x38] sm:$0xff]  ;;  %v2778_v9 = vld [vmem:[%s191_s7 + $0x30] sm:$0xff]  ;;  %v2783_v15 = vld [vmem:[%s191_s7 + $0x28] sm:$0xff]  ;;  %s2621_s30 = smov 15  }
  0x37   : > { %255 = vst [vmem:[#allocation1 + $0x30] ss:$2 sm:$0xff] %v2765_v2  ;;  %s2622_s28 = smov 127   ;;  %s2623_s4 = smov 113   ;;  %vm1216_vm2 = vcmask 1043456   ;;  %vm1375_vm9 = vcmask 293888  }
  0x38   : > { %247 = vst [vmem:[#allocation1 + $0x10] ss:$2 sm:$0xff] %v2768_v3  ;;  %s2624_s5 = smov 112   ;;  %s2625_s6 = smov 111  }
  0x39   : > { %s2221_s9 = sshll.u32 %s2749_s20, 9  ;;  %s2367_s21 = sshll.u32 %s2668_s16, 9 }
  0x3a   : > { %s3965_s10 = scalar_lea.vmem [#allocation8], %s2221_s9  ;;  %s2112_s25 = scalar_lea.hbm %s4085_s3, %s2367_s21 }
  0x3b   : > { %s2113_s26 = sshll.u32 %s3965_s10, 4  ;;  %s2115_s27 = sshll.u32 %s2112_s25, 4  ;;  %s2114_s26 = int_to_ptr.vmem [resolvable:$true] %s2113_s26  ;;  %s2116_s27 = int_to_ptr.hbm [resolvable:$true] %s2115_s27 }
  0x3c   : > { %v252_v4 = vld.sshfl [vmem:[#allocation1 + $0x20] sm:$0xff pattern:$0x75316420]  ;;  %v253_v11 = vld.sshfl [vmem:[#allocation1 + $0x28] sm:$0xff pattern:$0x75316420] }
  0x3d   : > { %290 = vrot.lane.b32.xlu1 %v252_v4, %s2618_s18  ;;  %v245_v7 = vld.sshfl [vmem:[#allocation1 + $0x8] sm:$0xff pattern:$0x75316420]  ;;  %v244_v8 = vld.sshfl [vmem:[#allocation1] sm:$0xff pattern:$0x75316420] }
  0x3e   : > { %302 = vrot.lane.b32.xlu2 %v245_v7, %s2618_s18  ;;  %286 = vrot.lane.b32.xlu0 %v244_v8, %s2618_s18  ;;  %v256_v10 = vld.sshfl [vmem:[#allocation1 + $0x30] sm:$0xff pattern:$0x75316420]  ;;  %v257_v12 = vld.sshfl [vmem:[#allocation1 + $0x38] sm:$0xff pattern:$0x75316420] }
  0x3f   : > { %v248_v13 = vld.sshfl [vmem:[#allocation1 + $0x10] sm:$0xff pattern:$0x75316420]  ;;  %v249_v14 = vld.sshfl [vmem:[#allocation1 + $0x18] sm:$0xff pattern:$0x75316420] }
  0x40   : > { %258 = vst [vmem:[#allocation1] ss:$2 sm:$0xff] %v2773_v5  ;;  %s2100_s16 = scalar_lea.sflag [#allocation4], %s2749_s20  ;;  %s2554_s7 = sshra.s32 %s2116_s27, 4  ;;  %s2555_s7 = int_to_ptr.hbm [resolvable:$true] %s2554_s7 }
  0x41   : > { %267 = vst [vmem:[#allocation1 + $0x30] ss:$2 sm:$0xff] %v2775_v6  ;;  %p2561_p11 = scmp.lt.s32.totalorder %s2555_s7, %s4085_s3 }
  0x42   : > { %264 = vst [vmem:[#allocation1 + $0x20] ss:$2 sm:$0xff] %v2778_v9 }
  0x43   : > { %261 = vst [vmem:[#allocation1 + $0x10] ss:$2 sm:$0xff] %v2783_v15 }
  0x45   : > { %292 = vrot.lane.b32.xlu1 %v256_v10, %s2618_s18 }
  0x46   : > { %308 = vrot.lane.b32.xlu2 %v257_v12, %s2618_s18  ;;  %288 = vrot.lane.b32.xlu0 %v248_v13, %s2618_s18 }
  0x47   : > { %v259_v16 = vld.sshfl [vmem:[#allocation1] sm:$0xff pattern:$0x75316420]  ;;  %v260_v17 = vld.sshfl [vmem:[#allocation1 + $0x8] sm:$0xff pattern:$0x75316420] }
  0x48   : > { %337 = vst [vmem:[#allocation1] ss:$2 sm:$0xff] %v2763_v1  ;;  %v269_v22 = vld.sshfl [vmem:[#allocation1 + $0x38] sm:$0xff pattern:$0x75316420] }
  0x49   : > { %v265_v18 = vld.sshfl [vmem:[#allocation1 + $0x20] sm:$0xff pattern:$0x75316420]  ;;  %v266_v19 = vld.sshfl [vmem:[#allocation1 + $0x28] sm:$0xff pattern:$0x75316420] }
  0x4a   : > { %v262_v20 = vld.sshfl [vmem:[#allocation1 + $0x10] sm:$0xff pattern:$0x75316420]  ;;  %v263_v21 = vld.sshfl [vmem:[#allocation1 + $0x18] sm:$0xff pattern:$0x75316420] }
  0x4b   : > { %341 = vst [vmem:[#allocation1 + $0x10] ss:$2 sm:$0xff] %v2768_v3  ;;  %v268_v23 = vld.sshfl [vmem:[#allocation1 + $0x30] sm:$0xff pattern:$0x75316420] }
  0x4c   : > { %345 = vst [vmem:[#allocation1 + $0x20] ss:$2 sm:$0xff] %v2761_v0 }
  0x4d   : > { %306 = vrot.lane.b32.xlu1 %v253_v11, %s2618_s18  ;;  %349 = vst [vmem:[#allocation1 + $0x30] ss:$2 sm:$0xff] %v2765_v2 }
  0x4e   : > { %304 = vrot.lane.b32.xlu0 %v249_v14, %s2618_s18  ;;  %294 = vrot.lane.b32.xlu2 %v259_v16, %s2618_s18 }
  0x4f   : > { %v338_v24 = vld.sshfl [vmem:[#allocation1] sm:$0xff pattern:$0x75316420]  ;;  %v2798_v25 = vld.sshfl [vmem:[#allocation1 + $0x8] sm:$0xff pattern:$0x75316420] }
  0x50   : > { %352 = vst [vmem:[#allocation1] ss:$2 sm:$0xff] %v2773_v5 }
  0x52   : > { %v342_v26 = vld.sshfl [vmem:[#allocation1 + $0x10] sm:$0xff pattern:$0x75316420]  ;;  %v2801_v27 = vld.sshfl [vmem:[#allocation1 + $0x18] sm:$0xff pattern:$0x75316420] }
  0x53   : > { %355 = vst [vmem:[#allocation1 + $0x10] ss:$2 sm:$0xff] %v2783_v15  ;;  %v346_v28 = vld.sshfl [vmem:[#allocation1 + $0x20] sm:$0xff pattern:$0x75316420] }
  0x54   : > { %v2804_v29 = vld.sshfl [vmem:[#allocation1 + $0x28] sm:$0xff pattern:$0x75316420]  ;;  %v350_v30 = vld.sshfl [vmem:[#allocation1 + $0x30] sm:$0xff pattern:$0x75316420] }
  0x55   : > { %300 = vrot.lane.b32.xlu1 %v268_v23, %s2618_s18  ;;  %358 = vst [vmem:[#allocation1 + $0x20] ss:$2 sm:$0xff] %v2778_v9  ;;  %v2808_v31 = vld.sshfl [vmem:[#allocation1 + $0x38] sm:$0xff pattern:$0x75316420] }
  0x56   : > { %298 = vrot.lane.b32.xlu0 %v265_v18, %s2618_s18  ;;  %296 = vrot.lane.b32.xlu2 %v262_v20, %s2618_s18  ;;  %361 = vst [vmem:[#allocation1 + $0x30] ss:$2 sm:$0xff] %v2775_v6 }
  0x57   : > { %v353_v32 = vld.sshfl [vmem:[#allocation1] sm:$0xff pattern:$0x75316420]  ;;  %v2813_v33 = vld.sshfl [vmem:[#allocation1 + $0x8] sm:$0xff pattern:$0x75316420] }
  0x58   : > { %4093 = vst [vmem:[#allocation12_spill] sm:$0xff] %v2813_v33 }
  0x59   : > { %429 = vst [vmem:[#allocation1] ss:$2 sm:$0xff] %v2763_v1 }
  0x5a   : > { %v356_v34 = vld.sshfl [vmem:[#allocation1 + $0x10] sm:$0xff pattern:$0x75316420]  ;;  %v2816_v35 = vld.sshfl [vmem:[#allocation1 + $0x18] sm:$0xff pattern:$0x75316420] }
  0x5b   : > { %433 = vst [vmem:[#allocation1 + $0x10] ss:$2 sm:$0xff] %v2768_v3 }
  0x5c   : > { %v359_v38 = vld.sshfl [vmem:[#allocation1 + $0x20] sm:$0xff pattern:$0x75316420]  ;;  %v2830_v41 = vld.sshfl [vmem:[#allocation1 + $0x28] sm:$0xff pattern:$0x75316420] }
  0x5d   : > { %312 = vrot.lane.b32.xlu1 %v263_v21, %s2618_s18  ;;  %v362_v36 = vld.sshfl [vmem:[#allocation1 + $0x30] sm:$0xff pattern:$0x75316420]  ;;  %v2820_v37 = vld.sshfl [vmem:[#allocation1 + $0x38] sm:$0xff pattern:$0x75316420] }
  0x5e   : > { %4094 = vst [vmem:[#allocation13_spill] sm:$0xff] %v2820_v37  ;;  %310 = vrot.lane.b32.xlu0 %v260_v17, %s2618_s18  ;;  %314 = vrot.lane.b32.xlu2 %v266_v19, %s2618_s18 }
  0x5f   : > { %441 = vst [vmem:[#allocation1 + $0x30] ss:$2 sm:$0xff] %v2765_v2 }
  0x60   : > { %v2825_v39 = vld.sshfl [vmem:[#allocation1] sm:$0xff pattern:$0x75316420]  ;;  %v2827_v40 = vld.sshfl [vmem:[#allocation1 + $0x8] sm:$0xff pattern:$0x75316420] }
  0x61   : > { %444 = vst [vmem:[#allocation1] ss:$2 sm:$0xff] %v2773_v5 }
  0x62   : > { %4095 = vst [vmem:[#allocation14_spill] sm:$0xff] %v2830_v41  ;;  %v2833_v42 = vld.sshfl [vmem:[#allocation1 + $0x10] sm:$0xff pattern:$0x75316420] }
  0x63   : > { %437 = vst [vmem:[#allocation1 + $0x20] ss:$2 sm:$0xff] %v2761_v0  ;;  %v2835_v43 = vld.sshfl [vmem:[#allocation1 + $0x18] sm:$0xff pattern:$0x75316420] }
  0x64   : > { %447 = vst [vmem:[#allocation1 + $0x10] ss:$2 sm:$0xff] %v2783_v15 }
  0x65   : > { %380 = vrot.lane.b32.xlu1 %v338_v24, %s2619_s23 }
  0x66   : > { %v2839_v44 = vld.sshfl [vmem:[#allocation1 + $0x30] sm:$0xff pattern:$0x75316420]  ;;  %v2841_v45 = vld.sshfl [vmem:[#allocation1 + $0x38] sm:$0xff pattern:$0x75316420]  ;;  %316 = vrot.lane.b32.xlu0 %v269_v22, %s2618_s18  ;;  %382 = vrot.lane.b32.xlu2 %v342_v26, %s2619_s23 }
  0x67   : > { %453 = vst [vmem:[#allocation1 + $0x30] ss:$2 sm:$0xff] %v2775_v6  ;;  %s2556_s18 = scalar_lea.hbm %s2555_s7, 512 }
  0x68   : > { %v2846_v46 = vld.sshfl [vmem:[#allocation1] sm:$0xff pattern:$0x75316420]  ;;  %v2848_v47 = vld.sshfl [vmem:[#allocation1 + $0x8] sm:$0xff pattern:$0x75316420]  ;;  %p2557_p1 = scmp.ne.s32.totalorder %s2555_s7, %s2556_s18 }
  0x69   : > { %4096 = vst [vmem:[#allocation15_spill] sm:$0xff] %v2846_v46 }
  0x6a   : > { %4097 = vst [vmem:[#allocation16_spill] sm:$0xff] %v2848_v47  ;;  %v2851_v48 = vld.sshfl [vmem:[#allocation1 + $0x20] sm:$0xff pattern:$0x75316420]  ;;  %p2558_p4 = pnand %p2557_p1, %p2719_p5 }
  0x6b   : > { %521 = vst [vmem:[#allocation1] ss:$2 sm:$0xff] %v2763_v1  ;;  %v2853_v49 = vld.sshfl [vmem:[#allocation1 + $0x28] sm:$0xff pattern:$0x75316420] }
  0x6c   : > { %450 = vst [vmem:[#allocation1 + $0x20] ss:$2 sm:$0xff] %v2778_v9  ;;  %v2856_v50 = vld.sshfl [vmem:[#allocation1 + $0x10] sm:$0xff pattern:$0x75316420]  ;;  %p2559_p8 = pneg %p2558_p4 }
  0x6d   : > { %v2858_v51 = vld.sshfl [vmem:[#allocation1 + $0x18] sm:$0xff pattern:$0x75316420]  ;;  %386 = vrot.lane.b32.xlu1 %v350_v30, %s2619_s23 }
  0x6e   : > { %525 = vst [vmem:[#allocation1 + $0x10] ss:$2 sm:$0xff] %v2768_v3  ;;  %v2862_v52 = vld.sshfl [vmem:[#allocation1 + $0x30] sm:$0xff pattern:$0x75316420]  ;;  %384 = vrot.lane.b32.xlu0 %v346_v28, %s2619_s23  ;;  %388 = vrot.lane.b32.xlu2 %v353_v32, %s2619_s23 }
  0x6f   : > { %4098 = vst [vmem:[#allocation17_spill] sm:$0xff] %v2862_v52  ;;  %v2864_v53 = vld.sshfl [vmem:[#allocation1 + $0x38] sm:$0xff pattern:$0x75316420] }
  0x70   : > { %4099 = vst [vmem:[#allocation18_spill] sm:$0xff] %v2864_v53 }
  0x71   : > { %533 = vst [vmem:[#allocation1 + $0x30] ss:$2 sm:$0xff] %v2765_v2 }
  0x72   : > { %v2869_v54 = vld.sshfl [vmem:[#allocation1] sm:$0xff pattern:$0x75316420]  ;;  %v2871_v55 = vld.sshfl [vmem:[#allocation1 + $0x8] sm:$0xff pattern:$0x75316420] }
  0x73   : > { %536 = vst [vmem:[#allocation1] ss:$2 sm:$0xff] %v2773_v5  ;;  %v2874_v56 = vld.sshfl [vmem:[#allocation1 + $0x20] sm:$0xff pattern:$0x75316420] }
  0x74   : > { %4100 = vst [vmem:[#allocation19_spill] sm:$0xff] %v2874_v56  ;;  %v2876_v57 = vld.sshfl [vmem:[#allocation1 + $0x28] sm:$0xff pattern:$0x75316420] }
  0x75   : > { %4101 = vst [vmem:[#allocation20_spill] sm:$0xff] %v2876_v57  ;;  %v527_v58 = vld.sshfl [vmem:[#allocation1 + $0x18] sm:$0xff pattern:$0x75316420]  ;;  %392 = vrot.lane.b32.xlu1 %v359_v38, %s2619_s23 }
  0x76   : > { %529 = vst [vmem:[#allocation1 + $0x20] ss:$2 sm:$0xff] %v2761_v0  ;;  %v526_v59 = vld.sshfl [vmem:[#allocation1 + $0x10] sm:$0xff pattern:$0x75316420]  ;;  %390 = vrot.lane.b32.xlu0 %v356_v34, %s2619_s23  ;;  %394 = vrot.lane.b32.xlu2 %v362_v36, %s2619_s23 }
  0x77   : > { %539 = vst [vmem:[#allocation1 + $0x10] ss:$2 sm:$0xff] %v2783_v15 }
  0x78   : > { %v2881_v60 = vld.sshfl [vmem:[#allocation1 + $0x30] sm:$0xff pattern:$0x75316420]  ;;  %v2883_v61 = vld.sshfl [vmem:[#allocation1 + $0x38] sm:$0xff pattern:$0x75316420] }
  0x79   : > { %545 = vst [vmem:[#allocation1 + $0x30] ss:$2 sm:$0xff] %v2775_v6 }
  0x7a   : > { %v2888_v62 = vld.sshfl [vmem:[#allocation1] sm:$0xff pattern:$0x75316420]  ;;  %v2890_v63 = vld.sshfl [vmem:[#allocation1 + $0x8] sm:$0xff pattern:$0x75316420] }
  0x7b   : > { %4102 = vst [vmem:[#allocation21_spill] sm:$0xff] %v2888_v62 }
  0x7c   : > { %4103 = vst [vmem:[#allocation22_spill] sm:$0xff] %v2890_v63 }
  0x7d   : > { %613 = vst [vmem:[#allocation1] ss:$2 sm:$0xff] %v2763_v1  ;;  %v2893_v4 = vld.sshfl [vmem:[#allocation1 + $0x20] sm:$0xff pattern:$0x75316420]  ;;  %582 = vrot.lane.b32.xlu1 %v527_v58, %s2620_s29 }
  0x7e   : > { %v2895_v7 = vld.sshfl [vmem:[#allocation1 + $0x28] sm:$0xff pattern:$0x75316420]  ;;  %v2898_v8 = vld.sshfl [vmem:[#allocation1 + $0x10] sm:$0xff pattern:$0x75316420]  ;;  %396 = vrot.lane.b32.xlu0 %v2798_v25, %s2619_s23  ;;  %398 = vrot.lane.b32.xlu2 %v2801_v27, %s2619_s23 }
  0x7f   : > { %542 = vst [vmem:[#allocation1 + $0x20] ss:$2 sm:$0xff] %v2778_v9  ;;  %v2900_v10 = vld.sshfl [vmem:[#allocation1 + $0x18] sm:$0xff pattern:$0x75316420] }
  0x80   : > { %617 = vst [vmem:[#allocation1 + $0x10] ss:$2 sm:$0xff] %v2768_v3  ;;  %v2903_v11 = vld.sshfl [vmem:[#allocation1 + $0x30] sm:$0xff pattern:$0x75316420] }
  0x81   : > { %4104 = vst [vmem:[#allocation23_spill] sm:$0xff] %v2903_v11  ;;  %v2905_v12 = vld.sshfl [vmem:[#allocation1 + $0x38] sm:$0xff pattern:$0x75316420] }
  0x82   : > { %4105 = vst [vmem:[#allocation24_spill] sm:$0xff] %v2905_v12 }
  0x83   : > { %625 = vst [vmem:[#allocation1 + $0x30] ss:$2 sm:$0xff] %v2765_v2 }
  0x84   : > { %v614_v13 = vld.sshfl [vmem:[#allocation1] sm:$0xff pattern:$0x75316420]  ;;  %v615_v14 = vld.sshfl [vmem:[#allocation1 + $0x8] sm:$0xff pattern:$0x75316420] }
  0x85   : > { %628 = vst [vmem:[#allocation1] ss:$2 sm:$0xff] %v2773_v5  ;;  %490 = vrot.lane.b32.xlu1 %v2835_v43, %s2621_s30 }
  0x86   : > { %v2914_v16 = vld.sshfl [vmem:[#allocation1 + $0x20] sm:$0xff pattern:$0x75316420]  ;;  %v2916_v17 = vld.sshfl [vmem:[#allocation1 + $0x28] sm:$0xff pattern:$0x75316420]  ;;  %566 = vrot.lane.b32.xlu0 %v526_v59, %s2620_s29 }
  0x87   : > { %4106 = vst [vmem:[#allocation25_spill] sm:$0xff] %v2914_v16  ;;  %v618_v18 = vld.sshfl [vmem:[#allocation1 + $0x10] sm:$0xff pattern:$0x75316420] }
  0x88   : > { %4107 = vst [vmem:[#allocation26_spill] sm:$0xff] %v2916_v17  ;;  %v619_v19 = vld.sshfl [vmem:[#allocation1 + $0x18] sm:$0xff pattern:$0x75316420]  ;;  %658 = vrot.lane.b32.xlu2 %v618_v18, %s2622_s28 }
  0x89   : > { %621 = vst [vmem:[#allocation1 + $0x20] ss:$2 sm:$0xff] %v2761_v0 }
  0x8a   : > { %631 = vst [vmem:[#allocation1 + $0x10] ss:$2 sm:$0xff] %v2783_v15  ;;  %v2920_v20 = vld.sshfl [vmem:[#allocation1 + $0x30] sm:$0xff pattern:$0x75316420] }
  0x8b   : > { %v2922_v21 = vld.sshfl [vmem:[#allocation1 + $0x38] sm:$0xff pattern:$0x75316420] }
  0x8c   : > { %637 = vst [vmem:[#allocation1 + $0x30] ss:$2 sm:$0xff] %v2775_v6  ;;  %v2929_v22 = vld.sshfl [vmem:[#allocation1] sm:$0xff pattern:$0x75316420] }
  0x8d   : > { %v2931_v23 = vld.sshfl [vmem:[#allocation1 + $0x8] sm:$0xff pattern:$0x75316420]  ;;  %672 = vrot.lane.b32.xlu1 %v615_v14, %s2622_s28 }
  0x8e   : > { %705 = vst [vmem:[#allocation1] ss:$2 sm:$0xff] %v2763_v1  ;;  %674 = vrot.lane.b32.xlu0 %v619_v19, %s2622_s28 }
  0x90   : > { %v2934_v24 = vld.sshfl [vmem:[#allocation1 + $0x20] sm:$0xff pattern:$0x75316420]  ;;  %v2936_v25 = vld.sshfl [vmem:[#allocation1 + $0x28] sm:$0xff pattern:$0x75316420] }
  0x91   : > { %634 = vst [vmem:[#allocation1 + $0x20] ss:$2 sm:$0xff] %v2778_v9  ;;  %v2939_v26 = vld.sshfl [vmem:[#allocation1 + $0x10] sm:$0xff pattern:$0x75316420] }
  0x92   : > { %v2941_v27 = vld.sshfl [vmem:[#allocation1 + $0x18] sm:$0xff pattern:$0x75316420] }
  0x93   : > { %709 = vst [vmem:[#allocation1 + $0x10] ss:$2 sm:$0xff] %v2768_v3  ;;  %v2944_v28 = vld.sshfl [vmem:[#allocation1 + $0x30] sm:$0xff pattern:$0x75316420] }
  0x94   : > { %4108 = vst [vmem:[#allocation27_spill] sm:$0xff] %v2944_v28  ;;  %v2946_v30 = vld.sshfl [vmem:[#allocation1 + $0x38] sm:$0xff pattern:$0x75316420] }
  0x95   : > { %4109 = vst [vmem:[#allocation28_spill] sm:$0xff] %v2946_v30  ;;  %v706_v32 = vld.sshfl [vmem:[#allocation1] sm:$0xff pattern:$0x75316420] }
  0x96   : > { %717 = vst [vmem:[#allocation1 + $0x30] ss:$2 sm:$0xff] %v2765_v2  ;;  %v707_v34 = vld.sshfl [vmem:[#allocation1 + $0x8] sm:$0xff pattern:$0x75316420]  ;;  %474 = vrot.lane.b32.xlu0 %v2833_v42, %s2621_s30 }
  0x97   : > { %720 = vst [vmem:[#allocation1] ss:$2 sm:$0xff] %v2773_v5 }
  0x98   : > { %v2952_v36 = vld.sshfl [vmem:[#allocation1 + $0x20] sm:$0xff pattern:$0x75316420]  ;;  %v2954_v38 = vld.sshfl [vmem:[#allocation1 + $0x28] sm:$0xff pattern:$0x75316420]  ;;  %v303_v57 = vpop.permute.xlu2 %302 }
  0x99   : > { %4110 = vst [vmem:[#allocation29_spill] sm:$0xff] %v2952_v36 }
  0x9a   : > { %4111 = vst [vmem:[#allocation30_spill] sm:$0xff] %v2954_v38  ;;  %v711_v43 = vld.sshfl [vmem:[#allocation1 + $0x18] sm:$0xff pattern:$0x75316420] }
  0x9b   : > { %713 = vst [vmem:[#allocation1 + $0x20] ss:$2 sm:$0xff] %v2761_v0  ;;  %v710_v58 = vld.sshfl [vmem:[#allocation1 + $0x10] sm:$0xff pattern:$0x75316420]  ;;  %766 = vrot.lane.b32.xlu2 %v711_v43, %s2623_s4 }
  0x9c   : > { %723 = vst [vmem:[#allocation1 + $0x10] ss:$2 sm:$0xff] %v2783_v15  ;;  %750 = vrot.lane.b32.xlu1 %v710_v58, %s2623_s4 }
  0x9d   : > { %v2959_v59 = vld.sshfl [vmem:[#allocation1 + $0x30] sm:$0xff pattern:$0x75316420]  ;;  %v2961_v14 = vld.sshfl [vmem:[#allocation1 + $0x38] sm:$0xff pattern:$0x75316420] }
  0x9e   : > { %729 = vst [vmem:[#allocation1 + $0x30] ss:$2 sm:$0xff] %v2775_v6  ;;  %v2967_v18 = vld.sshfl [vmem:[#allocation1] sm:$0xff pattern:$0x75316420]  ;;  %656 = vrot.lane.b32.xlu0 %v614_v13, %s2622_s28  ;;  %v318_v13 = vlaneseq }
  0x9f   : > { %4112 = vst [vmem:[#allocation31_spill] sm:$0xff] %v2967_v18  ;;  %v2969_v19 = vld.sshfl [vmem:[#allocation1 + $0x8] sm:$0xff pattern:$0x75316420] }
  0xa0   : > { %4113 = vst [vmem:[#allocation32_spill] sm:$0xff] %v2969_v19  ;;  %v309_v36 = vpop.permute.xlu2 %308 }
  0xa1   : > { %797 = vst [vmem:[#allocation1] ss:$2 sm:$0xff] %v2763_v1 }
  0xa2   : > { %v2972_v43 = vld.sshfl [vmem:[#allocation1 + $0x20] sm:$0xff pattern:$0x75316420]  ;;  %v2974_v56 = vld.sshfl [vmem:[#allocation1 + $0x28] sm:$0xff pattern:$0x75316420] }
  0xa3   : > { %726 = vst [vmem:[#allocation1 + $0x20] ss:$2 sm:$0xff] %v2778_v9  ;;  %v2977_v41 = vld.sshfl [vmem:[#allocation1 + $0x10] sm:$0xff pattern:$0x75316420]  ;;  %748 = vrot.lane.b32.xlu2 %v706_v32, %s2623_s4 }
  0xa4   : > { %v2979_v58 = vld.sshfl [vmem:[#allocation1 + $0x18] sm:$0xff pattern:$0x75316420]  ;;  %564 = vrot.lane.b32.xlu1 %v2869_v54, %s2620_s29 }
  0xa5   : > { %801 = vst [vmem:[#allocation1 + $0x10] ss:$2 sm:$0xff] %v2768_v3  ;;  %v2985_v42 = vld.sshfl [vmem:[#allocation1 + $0x30] sm:$0xff pattern:$0x75316420] }
  0xa6   : > { %4114 = vst [vmem:[#allocation33_spill] sm:$0xff] %v2985_v42  ;;  %v2987_v17 = vld.sshfl [vmem:[#allocation1 + $0x38] sm:$0xff pattern:$0x75316420]  ;;  %764 = vrot.lane.b32.xlu0 %v707_v34, %s2623_s4 }
  0xa7   : > { %4115 = vst [vmem:[#allocation34_spill] sm:$0xff] %v2987_v17 }
  0xa8   : > { %809 = vst [vmem:[#allocation1 + $0x30] ss:$2 sm:$0xff] %v2765_v2  ;;  %v799_v16 = vld.sshfl [vmem:[#allocation1 + $0x8] sm:$0xff pattern:$0x75316420]  ;;  %v3002_v11 = vpop.permute.xlu2 %294 }
  0xa9   : > { %v798_v38 = vld.sshfl [vmem:[#allocation1] sm:$0xff pattern:$0x75316420] }
  0xaa   : > { %812 = vst [vmem:[#allocation1] ss:$2 sm:$0xff] %v2773_v5  ;;  %v3033_v46 = vld.sshfl [vmem:[#allocation1 + $0x20] sm:$0xff pattern:$0x75316420] }
  0xab   : > { %580 = vrot.lane.b32.xlu2 %v2871_v55, %s2620_s29  ;;  %v3005_v55 = vand.u32 127, %v318_v13  ;;  %4118 = vst [vmem:[#allocation37_spill] sm:$0xff] %v3033_v46 }
  0xac   : > { %v802_v53 = vld.sshfl [vmem:[#allocation1 + $0x10] sm:$0xff pattern:$0x75316420]  ;;  %v803_v52 = vld.sshfl [vmem:[#allocation1 + $0x18] sm:$0xff pattern:$0x75316420] }
  0xad   : > { %815 = vst [vmem:[#allocation1 + $0x10] ss:$2 sm:$0xff] %v2783_v15  ;;  %842 = vrot.lane.b32.xlu1 %v802_v53, %s2624_s5  ;;  %vm320_vm0 = vcmp.lt.s32.totalorder %v3005_v55, 17  ;;  %vm412_vm1 = vcmp.lt.s32.totalorder %v3005_v55, 16  ;;  %vm688_vm3 = vcmp.lt.s32.totalorder %v3005_v55, 127  ;;  %vm872_vm4 = vcmp.lt.s32.totalorder %v3005_v55, 112 }
  0xae   : > { %856 = vrot.lane.b32.xlu0 %v799_v16, %s2624_s5  ;;  %vm596_vm5 = vcmp.lt.s32.totalorder %v3005_v55, 1  ;;  %vm504_vm6 = vcmp.lt.s32.totalorder %v3005_v55, 15  ;;  %vm780_vm7 = vcmp.lt.s32.totalorder %v3005_v55, 113  ;;  %vm964_vm8 = vcmp.lt.s32.totalorder %v3005_v55, 111 }
  0xaf   : > { %v810_v54 = vld.sshfl [vmem:[#allocation1 + $0x30] sm:$0xff pattern:$0x75316420]  ;;  %v811_v32 = vld.sshfl [vmem:[#allocation1 + $0x38] sm:$0xff pattern:$0x75316420]  ;;  %v291_v13 = vpop.permute.xlu1 %290 }
  0xb0   : > { %821 = vst [vmem:[#allocation1 + $0x30] ss:$2 sm:$0xff] %v2775_v6  ;;  %v287_v47 = vpop.permute.xlu0 %286 }
  0xb1   : > { %v2998_v37 = vld.sshfl [vmem:[#allocation1] sm:$0xff pattern:$0x75316420]  ;;  %v3000_v12 = vld.sshfl [vmem:[#allocation1 + $0x8] sm:$0xff pattern:$0x75316420] }
  0xb2   : > { %889 = vst [vmem:[#allocation1] ss:$2 sm:$0xff] %v2763_v1 }
  0xb3   : > { %858 = vrot.lane.b32.xlu2 %v803_v52, %s2624_s5  ;;  %v297_v52 = vpop.permute.xlu2 %296 }
  0xb4   : > { %v3007_v17 = vld.sshfl [vmem:[#allocation1 + $0x10] sm:$0xff pattern:$0x75316420]  ;;  %v3009_v53 = vld.sshfl [vmem:[#allocation1 + $0x18] sm:$0xff pattern:$0x75316420] }
  0xb5   : > { %893 = vst [vmem:[#allocation1 + $0x10] ss:$2 sm:$0xff] %v2768_v3  ;;  %488 = vrot.lane.b32.xlu1 %v2827_v40, %s2621_s30  ;;  %v3025_v40 = vsel %vm320_vm0, %v287_v47, %v303_v57 }
  0xb6   : > { %472 = vrot.lane.b32.xlu0 %v2825_v39, %s2621_s30 }
  0xb7   : > { %v3015_v34 = vld.sshfl [vmem:[#allocation1 + $0x30] sm:$0xff pattern:$0x75316420]  ;;  %v3017_v42 = vld.sshfl [vmem:[#allocation1 + $0x38] sm:$0xff pattern:$0x75316420] }
  0xb8   : > { %4116 = vst [vmem:[#allocation35_spill] sm:$0xff] %v3015_v34 }
  0xb9   : > { %4117 = vst [vmem:[#allocation36_spill] sm:$0xff] %v3017_v42  ;;  %v891_v30 = vld.sshfl [vmem:[#allocation1 + $0x8] sm:$0xff pattern:$0x75316420]  ;;  %v3029_v42 = vsel %vm320_vm0, %v303_v57, %v287_v47  ;;  %v293_v57 = vpop.permute.xlu1 %292 }
  0xba   : > { %901 = vst [vmem:[#allocation1 + $0x30] ss:$2 sm:$0xff] %v2765_v2  ;;  %v890_v28 = vld.sshfl [vmem:[#allocation1] sm:$0xff pattern:$0x75316420]  ;;  %v3048_v46 = vsel %vm320_vm0, %v309_v36, %v293_v57 }
  0xbb   : > { %904 = vst [vmem:[#allocation1] ss:$2 sm:$0xff] %v2773_v5  ;;  %840 = vrot.lane.b32.xlu2 %v798_v38, %s2624_s5  ;;  %v3039_v47 = vld.sshfl [vmem:[#allocation1 + $0x28] sm:$0xff pattern:$0x75316420]  ;;  %v3044_v38 = vsel %vm320_vm0, %v293_v57, %v309_v36  ;;  %v315_v62 = vpop.permute.xlu2 %314 }
  0xbc   : > { %v895_v16 = vld.sshfl [vmem:[#allocation1 + $0x18] sm:$0xff pattern:$0x75316420]  ;;  %v894_v34 = vld.sshfl [vmem:[#allocation1 + $0x10] sm:$0xff pattern:$0x75316420] }
  0xbd   : > { %907 = vst [vmem:[#allocation1 + $0x10] ss:$2 sm:$0xff] %v2783_v15  ;;  %950 = vrot.lane.b32.xlu1 %v895_v16, %s2625_s6  ;;  %v289_v16 = vpop.permute.xlu0 %288 }
  0xbe   : > { %4119 = vst [vmem:[#allocation38_spill] sm:$0xff] %v3039_v47  ;;  %934 = vrot.lane.b32.xlu0 %v894_v34, %s2625_s6 }
  0xbf   : > { %805 = vst [vmem:[#allocation1 + $0x20] ss:$2 sm:$0xff] %v2761_v0 }
  0xc0   : > { %4120 = vst [vmem:[#allocation39_spill] sm:$0xff] %v3044_v38 }
  0xc1   : > { %v903_v33 = vld.sshfl [vmem:[#allocation1 + $0x38] sm:$0xff pattern:$0x75316420]  ;;  %v902_v63 = vld.sshfl [vmem:[#allocation1 + $0x30] sm:$0xff pattern:$0x75316420]  ;;  %v307_v19 = vpop.permute.xlu1 %306 }
  0xc2   : > { %913 = vst [vmem:[#allocation1 + $0x30] ss:$2 sm:$0xff] %v2775_v6  ;;  %v3056_v38 = vsel %vm320_vm0, %v291_v13, %v307_v19  ;;  %v3060_v36 = vsel %vm320_vm0, %v307_v19, %v291_v13 }
  0xc3   : > { %4121 = vst [vmem:[#allocation40_spill] sm:$0xff] %v3048_v46  ;;  %846 = vrot.lane.b32.xlu2 %v810_v54, %s2624_s5  ;;  %v383_v46 = vpop.permute.xlu2 %382 }
  0xc4   : > { %4122 = vst [vmem:[#allocation41_spill] sm:$0xff] %v3056_v38 }
  0xc5   : > { %932 = vrot.lane.b32.xlu1 %v890_v28, %s2625_s6  ;;  %4123 = vst [vmem:[#allocation42_spill] sm:$0xff] %v3060_v36  ;;  %v305_v57 = vpop.permute.xlu0 %304 }
  0xc6   : > { %v806_v39 = vld.sshfl [vmem:[#allocation1 + $0x20] sm:$0xff pattern:$0x75316420]  ;;  %v807_v47 = vld.sshfl [vmem:[#allocation1 + $0x28] sm:$0xff pattern:$0x75316420]  ;;  %v322_v28 = vsel %vm320_vm0, %v289_v16, %v305_v57  ;;  %v330_v54 = vsel %vm320_vm0, %v305_v57, %v289_v16  ;;  %862 = vrot.lane.b32.xlu0 %v811_v32, %s2624_s5 }
  0xc7   : > { %818 = vst [vmem:[#allocation1 + $0x20] ss:$2 sm:$0xff] %v2778_v9 }
  0xc9   : > { %v301_v19 = vpop.permute.xlu1 %300 }
  0xcb   : > { %948 = vrot.lane.b32.xlu2 %v891_v30, %s2625_s6  ;;  %v3074_v36 = vpop.permute.xlu2 %388 }
  0xcd   : > { %938 = vrot.lane.b32.xlu1 %v902_v63, %s2625_s6  ;;  %v299_v13 = vpop.permute.xlu0 %298 }
  0xce   : > { %v3069_v34 = vld.sshfl [vmem:[#allocation1 + $0x20] sm:$0xff pattern:$0x75316420]  ;;  %v3071_v38 = vld.sshfl [vmem:[#allocation1 + $0x28] sm:$0xff pattern:$0x75316420]  ;;  %v3078_v18 = vsel %vm320_vm0, %v299_v13, %v315_v62  ;;  %v3082_v30 = vsel %vm320_vm0, %v315_v62, %v299_v13  ;;  %662 = vrot.lane.b32.xlu0 %v2920_v20, %s2622_s28 }
  0xcf   : > { %897 = vst [vmem:[#allocation1 + $0x20] ss:$2 sm:$0xff] %v2761_v0 }
  0xd0   : > { %4124 = vst [vmem:[#allocation43_spill] sm:$0xff] %v3078_v18 }
  0xd1   : > { %4125 = vst [vmem:[#allocation44_spill] sm:$0xff] %v3082_v30  ;;  %v313_v16 = vpop.permute.xlu1 %312 }
  0xd2   : > { %v3092_v57 = vsel %vm320_vm0, %v297_v52, %v313_v16  ;;  %v3096_v62 = vsel %vm320_vm0, %v313_v16, %v297_v52 }
  0xd3   : > { %954 = vrot.lane.b32.xlu2 %v903_v33, %s2625_s6  ;;  %v3098_v13 = vpop.permute.xlu2 %394 }
  0xd4   : > { %4126 = vst [vmem:[#allocation45_spill] sm:$0xff] %v3098_v13 }
  0xd5   : > { %678 = vrot.lane.b32.xlu1 %v2922_v21, %s2622_s28  ;;  %v311_v33 = vpop.permute.xlu0 %310 }
  0xd6   : > { %v898_v63 = vld.sshfl [vmem:[#allocation1 + $0x20] sm:$0xff pattern:$0x75316420]  ;;  %v899_v32 = vld.sshfl [vmem:[#allocation1 + $0x28] sm:$0xff pattern:$0x75316420]  ;;  %v3103_v20 = vsel %vm320_vm0, %v3002_v11, %v311_v33  ;;  %v3108_v21 = vsel %vm320_vm0, %v311_v33, %v3002_v11  ;;  %770 = vrot.lane.b32.xlu0 %v2961_v14, %s2623_s4 }
  0xd7   : > { %910 = vst [vmem:[#allocation1 + $0x20] ss:$2 sm:$0xff] %v2778_v9 }
  0xd8   : > { %4127 = vst [vmem:[#allocation46_spill] sm:$0xff] %v3103_v20 }
  0xd9   : > { %4128 = vst [vmem:[#allocation47_spill] sm:$0xff] %v3108_v21  ;;  %v381_v52 = vpop.permute.xlu1 %380 }
  0xdb   : > { %754 = vrot.lane.b32.xlu2 %v2959_v59, %s2623_s4  ;;  %v399_v18 = vpop.permute.xlu2 %398 }
  0xdc   : > { %v422_v59 = vsel %vm412_vm1, %v399_v18, %v383_v46 }
  0xdd   : > { %570 = vrot.lane.b32.xlu1 %v2881_v60, %s2620_s29  ;;  %v317_v16 = vpop.permute.xlu0 %316  ;;  %v414_v60 = vsel %vm412_vm1, %v383_v46, %v399_v18  ;;  %v999_v14 = vrot.slane %v422_v59, 4  ;;  %v908_v18 = vld.sshfl [vmem:[#allocation1 + $0x10] sm:$0xff pattern:$0x75316420] }
  0xde   : > { %v3119_v30 = vsel %vm320_vm0, %v301_v19, %v317_v16  ;;  %v3123_v11 = vsel %vm320_vm0, %v317_v16, %v301_v19  ;;  %v1000_v33 = vrot.slane %v414_v60, 4  ;;  %402 = vrot.lane.b32.xlu0 %v2808_v31, %s2619_s23  ;;  %v909_v16 = vld.sshfl [vmem:[#allocation1 + $0x18] sm:$0xff pattern:$0x75316420] }
  0xdf   : > { %4129 = vst [vmem:[#allocation48_spill] sm:$0xff] %v3119_v30  ;;  %v3132_v13 = vsel %vm1216_vm2, %v330_v54, %v999_v14  ;;  %v3173_v59 = vld.sshfl [vmem:[#allocation1 + $0x8] sm:$0xff pattern:$0x75316420] }
  0xe0   : > { %4130 = vst [vmem:[#allocation49_spill] sm:$0xff] %v3123_v11  ;;  %v3135_v30 = vsel %vm1216_vm2, %v322_v28, %v1000_v33 }
  0xe1   : > { %v3141_v19 = vpop.permute.xlu1 %386  ;;  %1081 = vst [vmem:[#allocation1 + $0x10] ss:$2 sm:$0xff] %v2768_v3 }
  0xe3   : > { %586 = vrot.lane.b32.xlu2 %v2883_v61, %s2620_s29  ;;  %v3148_v61 = vpop.permute.xlu2 %658 }
  0xe5   : > { %478 = vrot.lane.b32.xlu1 %v2839_v44, %s2621_s30  ;;  %v3143_v46 = vpop.permute.xlu0 %384 }
  0xe6   : > { %844 = vrot.lane.b32.xlu0 %v806_v39, %s2624_s5 }
  0xe8   : > { %v3156_v28 = vld.sshfl [vmem:[#allocation1 + $0x10] sm:$0xff pattern:$0x75316420]  ;;  %v3158_v54 = vld.sshfl [vmem:[#allocation1 + $0x18] sm:$0xff pattern:$0x75316420] }
  0xe9   : > { %v3152_v44 = vpop.permute.xlu1 %392  ;;  %1095 = vst [vmem:[#allocation1 + $0x10] ss:$2 sm:$0xff] %v2783_v15  ;;  %v3175_v15 = vld.sshfl [vmem:[#allocation1] sm:$0xff pattern:$0x75316420] }
  0xea   : > { %4131 = vst [vmem:[#allocation50_spill] sm:$0xff] %v3152_v44 }
  0xeb   : > { %494 = vrot.lane.b32.xlu2 %v2841_v45, %s2621_s30  ;;  %1077 = vst [vmem:[#allocation1] ss:$2 sm:$0xff] %v2763_v1 }
  0xed   : > { %860 = vrot.lane.b32.xlu1 %v807_v47, %s2624_s5  ;;  %v3154_v31 = vpop.permute.xlu0 %390 }
  0xee   : > { %952 = vrot.lane.b32.xlu0 %v899_v32, %s2625_s6 }
  0xf1   : > { %v3167_v45 = vpop.permute.xlu1 %582 }
  0xf3   : > { %936 = vrot.lane.b32.xlu2 %v898_v63, %s2625_s6 }
  0xf5   : > { %660 = vrot.lane.b32.xlu1 %v2934_v24, %s2622_s28  ;;  %v3164_v3 = vpop.permute.xlu2 %766  ;;  %v397_v47 = vpop.permute.xlu0 %396 }
  0xf6   : > { %v413_v39 = vsel %vm412_vm1, %v381_v52, %v397_v47  ;;  %v421_v60 = vsel %vm412_vm1, %v397_v47, %v381_v52  ;;  %752 = vrot.lane.b32.xlu0 %v2972_v43, %s2623_s4  ;;  %v3198_v47 = vld.sshfl [vmem:[#allocation1 + $0x8] sm:$0xff pattern:$0x75316420] }
  0xf7   : > { %v997_v63 = vrot.slane %v421_v60, 4  ;;  %v998_v14 = vrot.slane %v413_v39, 4 }
  0xf9   : > { %v3182_v24 = vsel %vm1216_vm2, %v3029_v42, %v997_v63  ;;  %v3186_v32 = vsel %vm1216_vm2, %v3025_v40, %v998_v14  ;;  %v3194_v1 = vpop.permute.xlu1 %490 }
  0xfb   : > { %676 = vrot.lane.b32.xlu2 %v2936_v25, %s2622_s28  ;;  %v3196_v25 = vld.sshfl [vmem:[#allocation1] sm:$0xff pattern:$0x75316420] }
  0xfc   : > { %1092 = vst [vmem:[#allocation1] ss:$2 sm:$0xff] %v2773_v5 }
  0xfd   : > { %768 = vrot.lane.b32.xlu1 %v2974_v56, %s2623_s4  ;;  %v3190_v52 = vpop.permute.xlu2 %748  ;;  %v567_v33 = vpop.permute.xlu0 %566 }
  0xfe   : > { %584 = vrot.lane.b32.xlu0 %v2895_v7, %s2620_s29 }
 0x101   : > { %v673_v43 = vpop.permute.xlu1 %672 }
 0x103   : > { %568 = vrot.lane.b32.xlu2 %v2893_v4, %s2620_s29 }
 0x105   : > { %400 = vrot.lane.b32.xlu1 %v2804_v29, %s2619_s23  ;;  %v3205_v56 = vpop.permute.xlu2 %580  ;;  %v675_v42 = vpop.permute.xlu0 %674 }
 0x106   : > { %492 = vrot.lane.b32.xlu0 %v2853_v49, %s2621_s30 }
 0x10b   : > { %476 = vrot.lane.b32.xlu2 %v2851_v48, %s2621_s30 }
 0x10d   : > { %850 = vrot.lane.b32.xlu1 %v3007_v17, %s2624_s5  ;;  %v859_v5 = vpop.permute.xlu2 %858  ;;  %v475_v40 = vpop.permute.xlu0 %474 }
 0x10e   : > { %v751_v4 = vpop.permute.xlu1 %750  ;;  %942 = vrot.lane.b32.xlu0 %v908_v18, %s2625_s6 }
 0x113   : > { %866 = vrot.lane.b32.xlu2 %v3009_v53, %s2624_s5 }
 0x115   : > { %958 = vrot.lane.b32.xlu1 %v909_v16, %s2625_s6  ;;  %v841_v29 = vpop.permute.xlu2 %840  ;;  %v657_v48 = vpop.permute.xlu0 %656  ;;  %v3238_v16 = vld.sshfl [vmem:[#allocation1 + $0x30] sm:$0xff pattern:$0x75316420] }
 0x116   : > { %v3219_v7 = vpop.permute.xlu1 %564  ;;  %682 = vrot.lane.b32.xlu0 %v2941_v27, %s2622_s28  ;;  %v3240_v27 = vld.sshfl [vmem:[#allocation1 + $0x38] sm:$0xff pattern:$0x75316420] }
 0x117   : > { %1089 = vst [vmem:[#allocation1 + $0x30] ss:$2 sm:$0xff] %v2765_v2 }
 0x11b   : > { %666 = vrot.lane.b32.xlu2 %v2939_v26, %s2622_s28 }
 0x11d   : > { %758 = vrot.lane.b32.xlu1 %v2977_v41, %s2623_s4  ;;  %v3225_v49 = vpop.permute.xlu2 %846  ;;  %v765_v53 = vpop.permute.xlu0 %764 }
 0x11e   : > { %574 = vrot.lane.b32.xlu0 %v2898_v8, %s2620_s29  ;;  %v3267_v14 = vld.sshfl [vmem:[#allocation1 + $0x38] sm:$0xff pattern:$0x75316420] }
 0x11f   : > { %v843_v17 = vpop.permute.xlu1 %842 }
 0x123   : > { %774 = vrot.lane.b32.xlu2 %v2979_v58, %s2623_s4  ;;  %v690_v58 = vsel %vm688_vm3, %v3148_v61, %v675_v42 }
 0x124   : > { %v1138_v2 = vrot.slane %v690_v58, 4  ;;  %v882_v58 = vsel %vm872_vm4, %v859_v5, %v843_v17 }
 0x125   : > { %590 = vrot.lane.b32.xlu1 %v2900_v10, %s2620_s29  ;;  %v949_v18 = vpop.permute.xlu2 %948  ;;  %v857_v41 = vpop.permute.xlu0 %856  ;;  %v698_v10 = vsel %vm688_vm3, %v675_v42, %v3148_v61  ;;  %v3265_v61 = vld.sshfl [vmem:[#allocation1 + $0x30] sm:$0xff pattern:$0x75316420]  ;;  %v3277_v42 = vsel %vm596_vm5, %v3167_v45, %v567_v33 }
 0x126   : > { %482 = vrot.lane.b32.xlu0 %v2856_v50, %s2621_s30  ;;  %v1139_v39 = vrot.slane %v698_v10, 4  ;;  %v3272_v50 = vsel %vm596_vm5, %v567_v33, %v3167_v45  ;;  %1101 = vst [vmem:[#allocation1 + $0x30] ss:$2 sm:$0xff] %v2775_v6  ;;  %v881_v10 = vsel %vm872_vm4, %v857_v41, %v841_v29  ;;  %v3288_v44 = vsel %vm1216_vm2, %v3156_v28, %v1138_v2 }
 0x127   : > { %v3235_v26 = vpop.permute.xlu1 %488  ;;  %v689_v33 = vsel %vm688_vm3, %v657_v48, %v673_v43  ;;  %v697_v6 = vsel %vm688_vm3, %v673_v43, %v657_v48  ;;  %v506_v28 = vsel %vm504_vm6, %v475_v40, %v3194_v1  ;;  %v3319_v43 = vsel %vm596_vm5, %v3205_v56, %v3219_v7 }
 0x128   : > { %v3292_v45 = vsel %vm1216_vm2, %v3158_v54, %v1139_v39  ;;  %v782_v54 = vsel %vm780_vm7, %v751_v4, %v3164_v3  ;;  %v1185_v48 = vrot.slane %v881_v10, 4 }
 0x12b   : > { %406 = vrot.lane.b32.xlu2 %v2816_v35, %s2619_s23  ;;  %v874_v35 = vsel %vm872_vm4, %v843_v17, %v859_v5  ;;  %v790_v5 = vsel %vm780_vm7, %v3164_v3, %v751_v4  ;;  %v3325_v3 = vld [vmem:[#allocation7 + $0x40] sm:$0xf]  ;;  %v1136_v4 = vrot.slane %v689_v33, 4 }
 0x12c   : > { %v1186_v11 = vrot.slane %v874_v35, 4 }
 0x12d   : > { %498 = vrot.lane.b32.xlu1 %v2858_v51, %s2621_s30  ;;  %v3254_v8 = vpop.permute.xlu2 %954  ;;  %v3259_v63 = vpop.permute.xlu0 %472  ;;  %v873_v51 = vsel %vm872_vm4, %v841_v29, %v857_v41  ;;  %v1187_v29 = vrot.slane %v882_v58, 4  ;;  %v1137_v41 = vrot.slane %v697_v6, 4  ;;  %v3347_v6 = vld [vmem:[#allocation7 + $0x30] sm:$0xff] }
 0x12e   : > { %v1184_v20 = vrot.slane %v873_v51, 4  ;;  %864 = vrot.lane.b32.xlu0 %v3000_v12, %s2624_s5  ;;  %v1267_v51 = vsel %vm1216_vm2, %v782_v54, %v1186_v11  ;;  %v3352_v54 = vld [vmem:[#allocation7 + $0x38] sm:$0xff] }
 0x12f   : > { %v951_v60 = vpop.permute.xlu1 %950  ;;  %v1268_v11 = vsel %vm1216_vm2, %v790_v5, %v1187_v29  ;;  %v1249_v5 = vsel %vm1216_vm2, %v3196_v25, %v1136_v4  ;;  %v1048_v29 = vrot.slane %v3272_v50, 4  ;;  %v1045_v25 = vrot.slane %v3319_v43, 4  ;;  %v3394_v43 = vld [vmem:[#allocation7 + $0x10] sm:$0xff] }
 0x130   : > { %v505_v50 = vsel %vm504_vm6, %v3259_v63, %v3235_v26 }
 0x133   : > { %848 = vrot.lane.b32.xlu2 %v2998_v37, %s2624_s5  ;;  %v514_v37 = vsel %vm504_vm6, %v3194_v1, %v475_v40  ;;  %v781_v1 = vsel %vm780_vm7, %v3190_v52, %v765_v53  ;;  %v789_v40 = vsel %vm780_vm7, %v765_v53, %v3190_v52 }
 0x134   : > { %v1265_v58 = vsel %vm1216_vm2, %v781_v1, %v1184_v20  ;;  %v1266_v20 = vsel %vm1216_vm2, %v789_v40, %v1185_v48  ;;  %v1047_v1 = vrot.slane %v3277_v42, 4  ;;  %v513_v42 = vsel %vm504_vm6, %v3235_v26, %v3259_v63  ;;  %v3396_v26 = vld [vmem:[#allocation7 + $0x18] sm:$0xff] }
 0x135   : > { %940 = vrot.lane.b32.xlu1 %v3175_v15, %s2625_s6  ;;  %v3321_v17 = vpop.permute.xlu2 %754  ;;  %v3327_v15 = vld [vmem:[#allocation7 + $0x48] sm:$0xf]  ;;  %v935_v39 = vpop.permute.xlu0 %934  ;;  %v1250_v48 = vsel %vm1216_vm2, %v3198_v47, %v1137_v41  ;;  %v1236_v41 = vsel %vm1216_vm2, %v506_v28, %v1048_v29 }
 0x136   : > { %v966_v10 = vsel %vm964_vm8, %v935_v39, %v951_v60  ;;  %v974_v33 = vsel %vm964_vm8, %v951_v60, %v935_v39  ;;  %v597_v60 = vsel %vm596_vm5, %v3219_v7, %v3205_v56  ;;  %v3363_v39 = vld [vmem:[#allocation7 + $0x20] sm:$0xff]  ;;  %v1307_v56 = vmul.f32 %v3347_v6, %v1267_v51  ;;  %v3376_v7 = vld [vmem:[#allocation7 + $0x28] sm:$0xff]  ;;  %664 = vrot.lane.b32.xlu0 %v2929_v22, %s2622_s28 }
 0x137   : > { %v933_v2 = vpop.permute.xlu1 %932  ;;  %v1309_v21 = vmul.f32 %v3325_v3, %v966_v10  ;;  %v1046_v4 = vrot.slane %v597_v60, 4  ;;  %v1305_v47 = vmul.f32 %v3363_v39, %v3288_v44  ;;  %v1235_v63 = vsel %vm1216_vm2, %v514_v37, %v1047_v1  ;;  %v3411_v10 = vld [vmem:[#allocation7] sm:$0xff] }
 0x138   : > { %v965_v35 = vsel %vm964_vm8, %v933_v2, %v949_v18  ;;  %v973_v12 = vsel %vm964_vm8, %v949_v18, %v933_v2  ;;  %v1310_v18 = vmul.f32 %v3327_v15, %v974_v33  ;;  %v1297_v2 = vmul.f32 %v3347_v6, %v1265_v58 }
 0x139   : > { %v1299_v52 = vmul.f32 %v3325_v3, %v965_v35  ;;  %v1300_v53 = vmul.f32 %v3327_v15, %v973_v12  ;;  %2232 = vmatpush.msk.msra.mxu2 %vm1216_vm2, %v1309_v21  ;;  %v1298_v21 = vmul.f32 %v3352_v54, %v1266_v20  ;;  %v1306_v35 = vmul.f32 %v3376_v7, %v3292_v45 }
 0x13a   : > { %2237 = vmatpush.msk.msra.mxu3 %vm1216_vm2, %v1310_v18  ;;  %v1295_v51 = vmul.f32 %v3363_v39, %v1249_v5  ;;  %v1233_v22 = vsel %vm1216_vm2, %v513_v42, %v1045_v25  ;;  %v1296_v28 = vmul.f32 %v3376_v7, %v1250_v48  ;;  %v1234_v58 = vsel %vm1216_vm2, %v505_v50, %v1046_v4  ;;  %v4133_v42 = vld [vmem:[#allocation32_spill] sm:$0xff]  ;;  %v4135_v50 = vld [vmem:[#allocation22_spill] sm:$0xff] }
 0x13b   : > { %2222 = vmatpush.msk.msra.mxu0 %vm1216_vm2, %v1299_v52  ;;  %2227 = vmatpush.msk.msra.mxu1 %vm1216_vm2, %v1300_v53  ;;  %v1303_v33 = vmul.f32 %v3394_v43, %v1235_v63  ;;  %v3418_v52 = vld [vmem:[#allocation7 + $0x8] sm:$0xff]  ;;  %v1293_v53 = vmul.f32 %v3394_v43, %v1233_v22  ;;  %v1301_v20 = vmul.f32 %v3411_v10, %v3132_v13 }
 0x13c   : > { %956 = vrot.lane.b32.xlu2 %v3173_v59, %s2625_s6  ;;  %v1308_v59 = vmul.f32 %v3352_v54, %v1268_v11  ;;  %1494 = vmatpush.msra.mxu2 %v1307_v56  ;;  %v1294_v11 = vmul.f32 %v3396_v26, %v1234_v58  ;;  %v1291_v60 = vmul.f32 %v3411_v10, %v3182_v24  ;;  %v3440_v56 = vld.sshfl [vmem:[#allocation1 + $0x20] sm:$0xff pattern:$0x75316420]  ;;  %v4137_v22 = vld [vmem:[#allocation15_spill] sm:$0xff] }
 0x13d   : > { %1406 = vmatpush.msra.mxu0 %v1297_v2  ;;  %v3388_v40 = vpop.permute.xlu2 %586  ;;  %1435 = vmatpush.msra.mxu1 %v1298_v21  ;;  %v863_v44 = vpop.permute.xlu0 %862  ;;  %v1302_v2 = vmul.f32 %v3418_v52, %v3135_v30  ;;  %v1292_v5 = vmul.f32 %v3418_v52, %v3186_v32  ;;  %v4134_v30 = vld [vmem:[#allocation21_spill] sm:$0xff]  ;;  %v3442_v32 = vld.sshfl [vmem:[#allocation1 + $0x28] sm:$0xff pattern:$0x75316420] }
 0x13e   : > { %1523 = vmatpush.msra.mxu3 %v1308_v59  ;;  %680 = vrot.lane.b32.xlu1 %v2931_v23, %s2622_s28  ;;  %v1304_v23 = vmul.f32 %v3396_v26, %v1236_v41  ;;  %1085 = vst [vmem:[#allocation1 + $0x20] ss:$2 sm:$0xff] %v2761_v0  ;;  %v876_v59 = vsel %vm872_vm4, %v3225_v49, %v863_v44 }
 0x13f   : > { %v939_v12 = vpop.permute.xlu1 %938  ;;  %1495 = vmatpush.msra.mxu2 %v1305_v47  ;;  %1407 = vmatpush.msra.mxu0 %v1295_v51  ;;  %v884_v21 = vsel %vm872_vm4, %v863_v44, %v3225_v49  ;;  %v1190_v41 = vrot.slane %v876_v59, 4 }
 0x140   : > { %v968_v37 = vsel %vm964_vm8, %v939_v12, %v3254_v8  ;;  %1524 = vmatpush.msra.mxu3 %v1306_v35  ;;  %v976_v45 = vsel %vm964_vm8, %v3254_v8, %v939_v12  ;;  %1436 = vmatpush.msra.mxu1 %v1296_v28  ;;  %v4132_v8 = vld [vmem:[#allocation31_spill] sm:$0xff]  ;;  %v1191_v35 = vrot.slane %v884_v21, 4  ;;  %v4136_v12 = vld [vmem:[#allocation12_spill] sm:$0xff] }
 0x141   : > { %v1329_v18 = vmul.f32 %v3325_v3, %v968_v37  ;;  %1496 = vmatpush.msra.mxu2 %v1303_v33  ;;  %v1330_v1 = vmul.f32 %v3327_v15, %v976_v45  ;;  %1408 = vmatpush.msra.mxu0 %v1293_v53 }
 0x142   : > { %1525 = vmatpush.msra.mxu3 %v1304_v23  ;;  %1437 = vmatpush.msra.mxu1 %v1294_v11 }
 0x143   : > { %1497 = vmatpush.msra.mxu2 %v1301_v20  ;;  %1409 = vmatpush.msra.mxu0 %v1291_v60 }
 0x144   : > { %756 = vrot.lane.b32.xlu2 %v4132_v8, %s2623_s4  ;;  %1526 = vmatpush.msra.mxu3 %v1302_v2  ;;  %v4139_v2 = vld [vmem:[#allocation35_spill] sm:$0xff] }
 0x145   : > { %v495_v29 = vpop.permute.xlu2 %494  ;;  %1438 = vmatpush.msra.mxu1 %v1292_v5  ;;  %2268 = vmatpush.msk.msrb.mxu2 %vm1216_vm2, %v1329_v18  ;;  %v663_v24 = vpop.permute.xlu0 %662  ;;  %v3475_v33 = vld.sshfl [vmem:[#allocation1 + $0x20] sm:$0xff pattern:$0x75316420]  ;;  %v3477_v23 = vld.sshfl [vmem:[#allocation1 + $0x28] sm:$0xff pattern:$0x75316420] }
 0x146   : > { %2273 = vmatpush.msk.msrb.mxu3 %vm1216_vm2, %v1330_v1  ;;  %772 = vrot.lane.b32.xlu0 %v4133_v42, %s2623_s4  ;;  %1098 = vst [vmem:[#allocation1 + $0x20] ss:$2 sm:$0xff] %v2778_v9  ;;  %v4140_v42 = vld [vmem:[#allocation36_spill] sm:$0xff] }
 0x147   : > { %v679_v13 = vpop.permute.xlu1 %678  ;;  %572 = vrot.lane.b32.xlu1 %v4134_v30, %s2620_s29 }
 0x148   : > { %v692_v48 = vsel %vm688_vm3, %v663_v24, %v679_v13  ;;  %v700_v25 = vsel %vm688_vm3, %v679_v13, %v663_v24 }
 0x149   : > { %v1142_v0 = vrot.slane %v692_v48, 4  ;;  %v1143_v47 = vrot.slane %v700_v25, 4 }
 0x14b   : > { %v1255_v58 = vsel %vm1216_vm2, %v3265_v61, %v1142_v0  ;;  %v1256_v45 = vsel %vm1216_vm2, %v3267_v14, %v1143_v47  ;;  %v4141_v0 = vld [vmem:[#allocation40_spill] sm:$0xff] }
 0x14c   : > { %588 = vrot.lane.b32.xlu2 %v4135_v50, %s2620_s29  ;;  %v1325_v11 = vmul.f32 %v3363_v39, %v1255_v58  ;;  %v1326_v20 = vmul.f32 %v3376_v7, %v1256_v45  ;;  %v4146_v45 = vld [vmem:[#allocation34_spill] sm:$0xff] }
 0x14d   : > { %v3457_v4 = vpop.permute.xlu2 %936  ;;  %v771_v51 = vpop.permute.xlu0 %770 }
 0x14e   : > { %404 = vrot.lane.b32.xlu0 %v4136_v12, %s2619_s23  ;;  %v784_v37 = vsel %vm780_vm7, %v3321_v17, %v771_v51  ;;  %v792_v49 = vsel %vm780_vm7, %v771_v51, %v3321_v17  ;;  %v4138_v17 = vld [vmem:[#allocation16_spill] sm:$0xff] }
 0x14f   : > { %v571_v63 = vpop.permute.xlu1 %570  ;;  %480 = vrot.lane.b32.xlu1 %v4137_v22, %s2621_s30  ;;  %v1271_v44 = vsel %vm1216_vm2, %v784_v37, %v1190_v41  ;;  %v1272_v28 = vsel %vm1216_vm2, %v792_v49, %v1191_v35  ;;  %v4143_v22 = vld [vmem:[#allocation27_spill] sm:$0xff]  ;;  %v4144_v37 = vld [vmem:[#allocation28_spill] sm:$0xff] }
 0x150   : > { %v1327_v53 = vmul.f32 %v3347_v6, %v1271_v44  ;;  %v1328_v18 = vmul.f32 %v3352_v54, %v1272_v28  ;;  %v600_v61 = vsel %vm596_vm5, %v571_v63, %v3388_v40  ;;  %v608_v14 = vsel %vm596_vm5, %v3388_v40, %v571_v63  ;;  %v4142_v63 = vld [vmem:[#allocation39_spill] sm:$0xff]  ;;  %v4145_v28 = vld [vmem:[#allocation33_spill] sm:$0xff] }
 0x151   : > { %v1051_v1 = vrot.slane %v608_v14, 4  ;;  %v1052_v9 = vrot.slane %v600_v61, 4 }
 0x152   : > { %1672 = vmatpush.msrb.mxu2 %v1327_v53  ;;  %1701 = vmatpush.msrb.mxu3 %v1328_v18 }
 0x154   : > { %496 = vrot.lane.b32.xlu2 %v4138_v17, %s2621_s30  ;;  %1673 = vmatpush.msrb.mxu2 %v1325_v11  ;;  %v4147_v11 = vld [vmem:[#allocation23_spill] sm:$0xff] }
 0x155   : > { %v677_v8 = vpop.permute.xlu2 %676  ;;  %1702 = vmatpush.msrb.mxu3 %v1326_v20  ;;  %v403_v5 = vpop.permute.xlu0 %402 }
 0x156   : > { %854 = vrot.lane.b32.xlu0 %v4139_v2, %s2624_s5  ;;  %v416_v24 = vsel %vm412_vm1, %v3141_v19, %v403_v5  ;;  %v424_v30 = vsel %vm412_vm1, %v403_v5, %v3141_v19  ;;  %v3554_v2 = vld [vmem:[#allocation5] sm:$0xff] }
 0x157   : > { %v479_v60 = vpop.permute.xlu1 %478  ;;  %870 = vrot.lane.b32.xlu1 %v4140_v42, %s2624_s5  ;;  %v1003_v50 = vrot.slane %v424_v30, 4  ;;  %v1004_v59 = vrot.slane %v416_v24, 4  ;;  %2233 = vmatmul.msk.f32.vlgmr.msra.gmra.mxu2 %vm1375_vm9, %v3554_v2  ;;  %v4149_v24 = vld [vmem:[#allocation13_spill] sm:$0xff] }
 0x158   : > { %v508_v13 = vsel %vm504_vm6, %v479_v60, %v495_v29  ;;  %v516_v40 = vsel %vm504_vm6, %v495_v29, %v479_v60  ;;  %2238 = vmatmul.msk.f32.vlgmr.msra.gmra.mxu3 %vm1375_vm9, %v3554_v2  ;;  %2223 = vmatmul.msk.f32.vlgmr.msra.gmra.mxu0 %vm1375_vm9, %v3554_v2 }
 0x159   : > { %v1239_v48 = vsel %vm1216_vm2, %v516_v40, %v1051_v1  ;;  %v1240_v25 = vsel %vm1216_vm2, %v508_v13, %v1052_v9  ;;  %v1223_v47 = vsel %vm1216_vm2, %v4141_v0, %v1003_v50  ;;  %v1224_v19 = vsel %vm1216_vm2, %v4142_v63, %v1004_v59  ;;  %v4148_v40 = vld [vmem:[#allocation24_spill] sm:$0xff]  ;;  %2228 = vmatmul.msk.f32.vlgmr.msra.gmra.mxu1 %vm1375_vm9, %v3554_v2 }
 0x15a   : > { %v1323_v21 = vmul.f32 %v3394_v43, %v1239_v48  ;;  %v1324_v29 = vmul.f32 %v3396_v26, %v1240_v25  ;;  %v1321_v41 = vmul.f32 %v3411_v10, %v1223_v47  ;;  %v1322_v35 = vmul.f32 %v3418_v52, %v1224_v19  ;;  %v4150_v47 = vld [vmem:[#allocation17_spill] sm:$0xff] }
 0x15c   : > { %946 = vrot.lane.b32.xlu2 %v3238_v16, %s2625_s6  ;;  %1674 = vmatpush.msrb.mxu2 %v1323_v21 }
 0x15d   : > { %1703 = vmatpush.msrb.mxu3 %v1324_v29  ;;  %v3518_v12 = vpop.permute.xlu2 %568  ;;  %v845_v16 = vpop.permute.xlu0 %844 }
 0x15e   : > { %1675 = vmatpush.msrb.mxu2 %v1321_v41  ;;  %962 = vrot.lane.b32.xlu0 %v3240_v27, %s2625_s6 }
 0x15f   : > { %1704 = vmatpush.msrb.mxu3 %v1322_v35  ;;  %v861_v51 = vpop.permute.xlu1 %860  ;;  %670 = vrot.lane.b32.xlu1 %v4143_v22, %s2622_s28  ;;  %v4151_v35 = vld [vmem:[#allocation18_spill] sm:$0xff] }
 0x160   : > { %v875_v20 = vsel %vm872_vm4, %v845_v16, %v861_v51 }
 0x161   : > { %v1188_v5 = vrot.slane %v875_v20, 4  ;;  %v4154_v20 = vld [vmem:[#allocation29_spill] sm:$0xff] }
 0x164   : > { %686 = vrot.lane.b32.xlu2 %v4144_v37, %s2622_s28 }
 0x165   : > { %v3526_v49 = vpop.permute.xlu2 %476  ;;  %v953_v58 = vpop.permute.xlu0 %952 }
 0x166   : > { %762 = vrot.lane.b32.xlu0 %v4145_v28, %s2623_s4  ;;  %v967_v27 = vsel %vm964_vm8, %v3457_v4, %v953_v58  ;;  %v975_v53 = vsel %vm964_vm8, %v953_v58, %v3457_v4  ;;  %v883_v4 = vsel %vm872_vm4, %v861_v51, %v845_v16 }
 0x167   : > { %v661_v44 = vpop.permute.xlu1 %660  ;;  %778 = vrot.lane.b32.xlu1 %v4146_v45, %s2623_s4  ;;  %v1319_v18 = vmul.f32 %v3325_v3, %v967_v27  ;;  %v1320_v17 = vmul.f32 %v3327_v15, %v975_v53  ;;  %v1189_v13 = vrot.slane %v883_v4, 4 }
 0x168   : > { %v691_v61 = vsel %vm688_vm3, %v661_v44, %v677_v8  ;;  %v699_v14 = vsel %vm688_vm3, %v677_v8, %v661_v44 }
 0x169   : > { %2250 = vmatpush.msk.msrb.mxu0 %vm1216_vm2, %v1319_v18  ;;  %2255 = vmatpush.msk.msrb.mxu1 %vm1216_vm2, %v1320_v17  ;;  %v1140_v9 = vrot.slane %v691_v61, 4  ;;  %v1141_v60 = vrot.slane %v699_v14, 4  ;;  %v4152_v17 = vld [vmem:[#allocation42_spill] sm:$0xff] }
 0x16b   : > { %v1253_v59 = vsel %vm1216_vm2, %v3475_v33, %v1140_v9  ;;  %v1254_v21 = vsel %vm1216_vm2, %v3477_v23, %v1141_v60 }
 0x16c   : > { %578 = vrot.lane.b32.xlu2 %v4147_v11, %s2620_s29  ;;  %v1315_v63 = vmul.f32 %v3363_v39, %v1253_v59  ;;  %v1316_v19 = vmul.f32 %v3376_v7, %v1254_v21 }
 0x16d   : > { %v3552_v1 = vpop.permute.xlu2 %866  ;;  %v753_v42 = vpop.permute.xlu0 %752 }
 0x16e   : > { %594 = vrot.lane.b32.xlu0 %v4148_v40, %s2620_s29 }
 0x16f   : > { %v769_v8 = vpop.permute.xlu1 %768  ;;  %410 = vrot.lane.b32.xlu1 %v4149_v24, %s2619_s23 }
 0x170   : > { %v783_v30 = vsel %vm780_vm7, %v753_v42, %v769_v8  ;;  %v791_v48 = vsel %vm780_vm7, %v769_v8, %v753_v42  ;;  %v4155_v8 = vld [vmem:[#allocation30_spill] sm:$0xff] }
 0x171   : > { %v1269_v25 = vsel %vm1216_vm2, %v783_v30, %v1188_v5  ;;  %v1270_v50 = vsel %vm1216_vm2, %v791_v48, %v1189_v13  ;;  %v4156_v13 = vld [vmem:[#allocation37_spill] sm:$0xff] }
 0x172   : > { %v1317_v29 = vmul.f32 %v3347_v6, %v1269_v25  ;;  %v1318_v0 = vmul.f32 %v3352_v54, %v1270_v50  ;;  %v4157_v50 = vld [vmem:[#allocation38_spill] sm:$0xff] }
 0x174   : > { %486 = vrot.lane.b32.xlu2 %v4150_v47, %s2621_s30  ;;  %1583 = vmatpush.msrb.mxu0 %v1317_v29  ;;  %v4158_v47 = vld [vmem:[#allocation25_spill] sm:$0xff] }
 0x175   : > { %1612 = vmatpush.msrb.mxu1 %v1318_v0  ;;  %v667_v41 = vpop.permute.xlu2 %666  ;;  %v585_v23 = vpop.permute.xlu0 %584 }
 0x176   : > { %1584 = vmatpush.msrb.mxu0 %v1315_v63  ;;  %502 = vrot.lane.b32.xlu0 %v4151_v35, %s2621_s30  ;;  %v599_v22 = vsel %vm596_vm5, %v3518_v12, %v585_v23  ;;  %v607_v37 = vsel %vm596_vm5, %v585_v23, %v3518_v12 }
 0x177   : > { %1613 = vmatpush.msrb.mxu1 %v1316_v19  ;;  %v401_v33 = vpop.permute.xlu1 %400  ;;  %852 = vrot.lane.b32.xlu1 %v3069_v34, %s2624_s5  ;;  %v1049_v45 = vrot.slane %v607_v37, 4  ;;  %v1050_v27 = vrot.slane %v599_v22, 4  ;;  %v1096_v22 = vld.sshfl [vmem:[#allocation1 + $0x10] sm:$0xff pattern:$0x75316420] }
 0x178   : > { %v415_v51 = vsel %vm412_vm1, %v3143_v46, %v401_v33  ;;  %v423_v16 = vsel %vm412_vm1, %v401_v33, %v3143_v46  ;;  %v4159_v33 = vld [vmem:[#allocation26_spill] sm:$0xff]  ;;  %v1097_v37 = vld.sshfl [vmem:[#allocation1 + $0x18] sm:$0xff pattern:$0x75316420] }
 0x179   : > { %v1001_v44 = vrot.slane %v423_v16, 4  ;;  %v1002_v28 = vrot.slane %v415_v51, 4 }
 0x17b   : > { %v1221_v61 = vsel %vm1216_vm2, %v4152_v17, %v1001_v44  ;;  %v4161_v17 = vld [vmem:[#allocation19_spill] sm:$0xff] }
 0x17c   : > { %868 = vrot.lane.b32.xlu2 %v3071_v38, %s2624_s5 }
 0x17d   : > { %v775_v34 = vpop.permute.xlu2 %774  ;;  %v493_v46 = vpop.permute.xlu0 %492 }
 0x17e   : > { %944 = vrot.lane.b32.xlu0 %v3440_v56, %s2625_s6  ;;  %v507_v38 = vsel %vm504_vm6, %v3526_v49, %v493_v46  ;;  %v515_v12 = vsel %vm504_vm6, %v493_v46, %v3526_v49  ;;  %v4153_v56 = vld [vmem:[#allocation41_spill] sm:$0xff]  ;;  %v1311_v49 = vmul.f32 %v3411_v10, %v1221_v61 }
 0x17f   : > { %v851_v58 = vpop.permute.xlu1 %850  ;;  %960 = vrot.lane.b32.xlu1 %v3442_v32, %s2625_s6  ;;  %v1237_v53 = vsel %vm1216_vm2, %v515_v12, %v1049_v45  ;;  %v1238_v18 = vsel %vm1216_vm2, %v507_v38, %v1050_v27  ;;  %v1222_v14 = vsel %vm1216_vm2, %v4153_v56, %v1002_v28  ;;  %v4160_v45 = vld [vmem:[#allocation14_spill] sm:$0xff]  ;;  %v3668_v12 = vld [vmem:[#allocation5 + $0x8] sm:$0xff]  ;;  %v4162_v56 = vld [vmem:[#allocation20_spill] sm:$0xff] }
 0x180   : > { %v1313_v32 = vmul.f32 %v3394_v43, %v1237_v53  ;;  %v1314_v11 = vmul.f32 %v3396_v26, %v1238_v18  ;;  %v1312_v4 = vmul.f32 %v3418_v52, %v1222_v14  ;;  %v878_v48 = vsel %vm872_vm4, %v851_v58, %v3552_v1  ;;  %2234 = vmatmul.msk.f32.gmra.mxu2 %vm1375_vm9, %v3668_v12 }
 0x181   : > { %v886_v25 = vsel %vm872_vm4, %v3552_v1, %v851_v58  ;;  %v1194_v21 = vrot.slane %v878_v48, 4  ;;  %2239 = vmatmul.msk.f32.gmra.mxu3 %vm1375_vm9, %v3668_v12  ;;  %2224 = vmatmul.msk.f32.gmra.mxu0 %vm1375_vm9, %v3668_v12 }
 0x182   : > { %1585 = vmatpush.msrb.mxu0 %v1313_v32  ;;  %1614 = vmatpush.msrb.mxu1 %v1314_v11  ;;  %v1195_v29 = vrot.slane %v886_v25, 4 }
 0x183   : > { %2229 = vmatmul.msk.f32.gmra.mxu1 %vm1375_vm9, %v3668_v12 }
 0x184   : > { %668 = vrot.lane.b32.xlu2 %v4154_v20, %s2622_s28  ;;  %1586 = vmatpush.msrb.mxu0 %v1311_v49  ;;  %v3692_v49 = vld [vmem:[#allocation5 + $0x10] sm:$0xff] }
 0x185   : > { %v407_v9 = vpop.permute.xlu2 %406  ;;  %1615 = vmatpush.msrb.mxu1 %v1312_v4  ;;  %v943_v5 = vpop.permute.xlu0 %942 }
 0x186   : > { %684 = vrot.lane.b32.xlu0 %v4155_v8, %s2622_s28  ;;  %v418_v14 = vsel %vm412_vm1, %v3154_v31, %v407_v9  ;;  %v426_v32 = vsel %vm412_vm1, %v407_v9, %v3154_v31  ;;  %s2560_s28 = scalar_lea.hbm %s4085_s3, 1024 }
 0x187   : > { %v959_v60 = vpop.permute.xlu1 %958  ;;  %760 = vrot.lane.b32.xlu1 %v4156_v13, %s2623_s4  ;;  %v1007_v4 = vrot.slane %v426_v32, 4  ;;  %p2562_p9 = scmp.lt.s32.totalorder %s2560_s28, %s2556_s18 }
 0x188   : > { %v970_v40 = vsel %vm964_vm8, %v943_v5, %v959_v60  ;;  %v978_v42 = vsel %vm964_vm8, %v959_v60, %v943_v5  ;;  %v1008_v60 = vrot.slane %v418_v14, 4  ;;  %2235 = vmatmul.msk.f32.gmra.mxu2 %vm1375_vm9, %v3692_v49 }
 0x189   : > { %v1349_v24 = vmul.f32 %v3325_v3, %v970_v40  ;;  %v1350_v30 = vmul.f32 %v3327_v15, %v978_v42  ;;  %2240 = vmatmul.msk.f32.gmra.mxu3 %vm1375_vm9, %v3692_v49  ;;  %2225 = vmatmul.msk.f32.gmra.mxu0 %vm1375_vm9, %v3692_v49  ;;  %v1227_v48 = vsel %vm1216_vm2, %v3096_v62, %v1007_v4  ;;  %p2563_p2 = por %p2562_p9, %p2561_p11 }
 0x18a   : > { %v1228_v25 = vsel %vm1216_vm2, %v3092_v57, %v1008_v60 }
 0x18b   : > { %2304 = vmatpush.msk.msra.mxu2 %vm1216_vm2, %v1349_v24  ;;  %2309 = vmatpush.msk.msra.mxu3 %vm1216_vm2, %v1350_v30  ;;  %p2564_p10 = pnand %p2563_p2, %p2559_p8 }
 0x18c   : > { %776 = vrot.lane.b32.xlu2 %v4157_v50, %s2623_s4  ;;  %2230 = vmatmul.msk.f32.gmra.mxu1 %vm1375_vm9, %v3692_v49 }
 0x18d   : > { %v3644_v59 = vpop.permute.xlu2 %848  ;;  %v683_v63 = vpop.permute.xlu0 %682 }
 0x18e   : > { %576 = vrot.lane.b32.xlu0 %v4158_v47, %s2620_s29  ;;  %v694_v35 = vsel %vm688_vm3, %v667_v41, %v683_v63  ;;  %v702_v23 = vsel %vm688_vm3, %v683_v63, %v667_v41  ;;  %v3716_v47 = vld [vmem:[#allocation5 + $0x18] sm:$0xff] }
 0x18f   : > { %v759_v0 = vpop.permute.xlu1 %758  ;;  %592 = vrot.lane.b32.xlu1 %v4159_v33, %s2620_s29  ;;  %v1146_v44 = vrot.slane %v694_v35, 4  ;;  %v1147_v28 = vrot.slane %v702_v23, 4 }
 0x190   : > { %v786_v19 = vsel %vm780_vm7, %v759_v0, %v775_v34  ;;  %v794_v1 = vsel %vm780_vm7, %v775_v34, %v759_v0  ;;  %v1342_v0 = vmul.f32 %v3418_v52, %v1228_v25  ;;  %2236 = vmatmul.msk.f32.gmra.mxu2 %vm1375_vm9, %v3716_v47 }
 0x191   : > { %v1275_v51 = vsel %vm1216_vm2, %v786_v19, %v1194_v21  ;;  %v1276_v16 = vsel %vm1216_vm2, %v794_v1, %v1195_v29  ;;  %v1259_v27 = vsel %vm1216_vm2, %v1096_v22, %v1146_v44  ;;  %v1260_v41 = vsel %vm1216_vm2, %v1097_v37, %v1147_v28  ;;  %2241 = vmatmul.msk.f32.gmra.mxu3 %vm1375_vm9, %v3716_v47 }
 0x192   : > { %v1347_v58 = vmul.f32 %v3347_v6, %v1275_v51  ;;  %v1348_v34 = vmul.f32 %v3352_v54, %v1276_v16  ;;  %v1345_v46 = vmul.f32 %v3363_v39, %v1259_v27  ;;  %v1346_v38 = vmul.f32 %v3376_v7, %v1260_v41  ;;  %2226 = vmatmul.msk.f32.gmra.mxu0 %vm1375_vm9, %v3716_v47  ;;  %v1094_v27 = vld.sshfl [vmem:[#allocation1 + $0x8] sm:$0xff pattern:$0x75316420] }
 0x193   : > { %v1341_v29 = vmul.f32 %v3411_v10, %v1227_v48 }
 0x194   : > { %408 = vrot.lane.b32.xlu2 %v4160_v45, %s2619_s23  ;;  %1850 = vmatpush.msra.mxu2 %v1347_v58  ;;  %v1093_v45 = vld.sshfl [vmem:[#allocation1] sm:$0xff pattern:$0x75316420] }
 0x195   : > { %1879 = vmatpush.msra.mxu3 %v1348_v34  ;;  %v575_v61 = vpop.permute.xlu0 %574  ;;  %2231 = vmatmul.msk.f32.gmra.mxu1 %vm1375_vm9, %v3716_v47 }
 0x196   : > { %v957_v53 = vpop.permute.xlu2 %956  ;;  %1851 = vmatpush.msra.mxu2 %v1345_v46  ;;  %484 = vrot.lane.b32.xlu0 %v4161_v17, %s2621_s30 }
 0x197   : > { %1880 = vmatpush.msra.mxu3 %v1346_v38  ;;  %v591_v18 = vpop.permute.xlu1 %590  ;;  %500 = vrot.lane.b32.xlu1 %v4162_v56, %s2621_s30 }
 0x198   : > { %v602_v11 = vsel %vm596_vm5, %v575_v61, %v591_v18  ;;  %v610_v20 = vsel %vm596_vm5, %v591_v18, %v575_v61  ;;  %2269 = vmatmul.msk.f32.vlgmr.msrb.gmra.mxu2 %vm1375_vm9, %v3554_v2 }
 0x199   : > { %v1055_v13 = vrot.slane %v610_v20, 4  ;;  %v1056_v31 = vrot.slane %v602_v11, 4  ;;  %2274 = vmatmul.msk.f32.vlgmr.msrb.gmra.mxu3 %vm1375_vm9, %v3554_v2 }
 0x19a   : > { %2251 = vmatmul.msk.f32.vlgmr.msrb.gmra.mxu0 %vm1375_vm9, %v3554_v2 }
 0x19d   : > { %v483_v9 = vpop.permute.xlu0 %482  ;;  %2256 = vmatmul.msk.f32.vlgmr.msrb.gmra.mxu1 %vm1375_vm9, %v3554_v2 }
 0x19e   : > { %v757_v8 = vpop.permute.xlu2 %756 }
 0x19f   : > { %v499_v5 = vpop.permute.xlu1 %498 }
 0x1a0   : > { %v510_v40 = vsel %vm504_vm6, %v483_v9, %v499_v5  ;;  %v518_v42 = vsel %vm504_vm6, %v499_v5, %v483_v9  ;;  %2270 = vmatmul.msk.f32.gmra.mxu2 %vm1375_vm9, %v3668_v12 }
 0x1a1   : > { %v1243_v24 = vsel %vm1216_vm2, %v518_v42, %v1055_v13  ;;  %v1244_v30 = vsel %vm1216_vm2, %v510_v40, %v1056_v31  ;;  %2275 = vmatmul.msk.f32.gmra.mxu3 %vm1375_vm9, %v3668_v12 }
 0x1a2   : > { %v1343_v50 = vmul.f32 %v3394_v43, %v1243_v24  ;;  %v1344_v21 = vmul.f32 %v3396_v26, %v1244_v30  ;;  %2252 = vmatmul.msk.f32.gmra.mxu0 %vm1375_vm9, %v3668_v12 }
 0x1a4   : > { %1852 = vmatpush.msra.mxu2 %v1343_v50  ;;  %1881 = vmatpush.msra.mxu3 %v1344_v21 }
 0x1a5   : > { %v865_v63 = vpop.permute.xlu0 %864  ;;  %2257 = vmatmul.msk.f32.gmra.mxu1 %vm1375_vm9, %v3668_v12 }
 0x1a6   : > { %v589_v62 = vpop.permute.xlu2 %588  ;;  %1853 = vmatpush.msra.mxu2 %v1341_v29  ;;  %1882 = vmatpush.msra.mxu3 %v1342_v0  ;;  %v877_v44 = vsel %vm872_vm4, %v3644_v59, %v865_v63  ;;  %v885_v28 = vsel %vm872_vm4, %v865_v63, %v3644_v59  ;;  %v4163_v63 = vld [vmem:[#allocation47_spill] sm:$0xff] }
 0x1a7   : > { %v941_v57 = vpop.permute.xlu1 %940  ;;  %v1192_v41 = vrot.slane %v877_v44, 4  ;;  %v1193_v46 = vrot.slane %v885_v28, 4 }
 0x1a8   : > { %v969_v19 = vsel %vm964_vm8, %v941_v57, %v957_v53  ;;  %v977_v1 = vsel %vm964_vm8, %v957_v53, %v941_v57  ;;  %2271 = vmatmul.msk.f32.gmra.mxu2 %vm1375_vm9, %v3692_v49 }
 0x1a9   : > { %v1339_v33 = vmul.f32 %v3325_v3, %v969_v19  ;;  %v1340_v35 = vmul.f32 %v3327_v15, %v977_v1  ;;  %2276 = vmatmul.msk.f32.gmra.mxu3 %vm1375_vm9, %v3692_v49  ;;  %v4164_v19 = vld [vmem:[#allocation46_spill] sm:$0xff] }
 0x1aa   : > { %2253 = vmatmul.msk.f32.gmra.mxu0 %vm1375_vm9, %v3692_v49 }
 0x1ab   : > { %2286 = vmatpush.msk.msra.mxu0 %vm1216_vm2, %v1339_v33  ;;  %2291 = vmatpush.msk.msra.mxu1 %vm1216_vm2, %v1340_v35 }
 0x1ad   : > { %v665_v23 = vpop.permute.xlu0 %664  ;;  %2258 = vmatmul.msk.f32.gmra.mxu1 %vm1375_vm9, %v3692_v49 }
 0x1ae   : > { %v497_v51 = vpop.permute.xlu2 %496 }
 0x1b0   : > { %v681_v16 = vpop.permute.xlu1 %680  ;;  %2272 = vmatmul.msk.f32.gmra.mxu2 %vm1375_vm9, %v3716_v47 }
 0x1b1   : > { %v693_v22 = vsel %vm688_vm3, %v665_v23, %v681_v16  ;;  %v701_v37 = vsel %vm688_vm3, %v681_v16, %v665_v23  ;;  %2277 = vmatmul.msk.f32.gmra.mxu3 %vm1375_vm9, %v3716_v47 }
 0x1b2   : > { %v1144_v58 = vrot.slane %v693_v22, 4  ;;  %v1145_v34 = vrot.slane %v701_v37, 4  ;;  %2254 = vmatmul.msk.f32.gmra.mxu0 %vm1375_vm9, %v3716_v47 }
 0x1b4   : > { %v1257_v14 = vsel %vm1216_vm2, %v1093_v45, %v1144_v58  ;;  %v1258_v32 = vsel %vm1216_vm2, %v1094_v27, %v1145_v34 }
 0x1b5   : > { %v1335_v4 = vmul.f32 %v3363_v39, %v1257_v14  ;;  %v1336_v60 = vmul.f32 %v3376_v7, %v1258_v32  ;;  %2259 = vmatmul.msk.f32.gmra.mxu1 %vm1375_vm9, %v3716_v47 }
 0x1b6   : > { %v947_v53 = vpop.permute.xlu2 %946 }
 0x1b8   : > { %v773_v38 = vpop.permute.xlu0 %772  ;;  %2305 = vmatmul.msk.f32.vlgmr.msra.gmra.mxu2 %vm1375_vm9, %v3554_v2 }
 0x1b9   : > { %v785_v18 = vsel %vm780_vm7, %v757_v8, %v773_v38  ;;  %v793_v59 = vsel %vm780_vm7, %v773_v38, %v757_v8  ;;  %v573_v17 = vpop.permute.xlu1 %572  ;;  %2310 = vmatmul.msk.f32.vlgmr.msra.gmra.mxu3 %vm1375_vm9, %v3554_v2 }
 0x1ba   : > { %v1273_v61 = vsel %vm1216_vm2, %v785_v18, %v1192_v41  ;;  %v1274_v56 = vsel %vm1216_vm2, %v793_v59, %v1193_v46  ;;  %v601_v8 = vsel %vm596_vm5, %v573_v17, %v589_v62  ;;  %v609_v5 = vsel %vm596_vm5, %v589_v62, %v573_v17  ;;  %v1102_v17 = vld.sshfl [vmem:[#allocation1 + $0x30] sm:$0xff pattern:$0x75316420] }
 0x1bb   : > { %v1337_v11 = vmul.f32 %v3347_v6, %v1273_v61  ;;  %v1338_v20 = vmul.f32 %v3352_v54, %v1274_v56  ;;  %v1053_v31 = vrot.slane %v609_v5, 4  ;;  %v1054_v9 = vrot.slane %v601_v8, 4  ;;  %v1103_v61 = vld.sshfl [vmem:[#allocation1 + $0x38] sm:$0xff pattern:$0x75316420] }
 0x1bd   : > { %1761 = vmatpush.msra.mxu0 %v1337_v11  ;;  %1790 = vmatpush.msra.mxu1 %v1338_v20 }
 0x1be   : > { %v687_v21 = vpop.permute.xlu2 %686 }
 0x1bf   : > { %1762 = vmatpush.msra.mxu0 %v1335_v4  ;;  %1791 = vmatpush.msra.mxu1 %v1336_v60 }
 0x1c0   : > { %v405_v13 = vpop.permute.xlu0 %404  ;;  %2306 = vmatmul.msk.f32.gmra.mxu2 %vm1375_vm9, %v3668_v12 }
 0x1c1   : > { %v417_v40 = vsel %vm412_vm1, %v3074_v36, %v405_v13  ;;  %v425_v42 = vsel %vm412_vm1, %v405_v13, %v3074_v36  ;;  %v481_v24 = vpop.permute.xlu1 %480  ;;  %2311 = vmatmul.msk.f32.gmra.mxu3 %vm1375_vm9, %v3668_v12 }
 0x1c2   : > { %v1005_v30 = vrot.slane %v425_v42, 4  ;;  %v1006_v48 = vrot.slane %v417_v40, 4  ;;  %v509_v25 = vsel %vm504_vm6, %v481_v24, %v497_v51  ;;  %v517_v50 = vsel %vm504_vm6, %v497_v51, %v481_v24 }
 0x1c3   : > { %v1241_v29 = vsel %vm1216_vm2, %v517_v50, %v1053_v31  ;;  %v1242_v0 = vsel %vm1216_vm2, %v509_v25, %v1054_v9 }
 0x1c4   : > { %v1333_v62 = vmul.f32 %v3394_v43, %v1241_v29  ;;  %v1334_v57 = vmul.f32 %v3396_v26, %v1242_v0  ;;  %v1225_v36 = vsel %vm1216_vm2, %v4163_v63, %v1005_v30  ;;  %v1226_v1 = vsel %vm1216_vm2, %v4164_v19, %v1006_v48  ;;  %v4165_v48 = vld [vmem:[#allocation45_spill] sm:$0xff] }
 0x1c5   : > { %v1331_v33 = vmul.f32 %v3411_v10, %v1225_v36  ;;  %v1332_v35 = vmul.f32 %v3418_v52, %v1226_v1 }
 0x1c6   : > { %1763 = vmatpush.msra.mxu0 %v1333_v62  ;;  %1792 = vmatpush.msra.mxu1 %v1334_v57  ;;  %v579_v16 = vpop.permute.xlu2 %578 }
 0x1c8   : > { %1764 = vmatpush.msra.mxu0 %v1331_v33  ;;  %1793 = vmatpush.msra.mxu1 %v1332_v35  ;;  %v855_v23 = vpop.permute.xlu0 %854 }
 0x1c9   : > { %v871_v51 = vpop.permute.xlu1 %870  ;;  %2287 = vmatmul.msk.f32.vlgmr.msra.gmra.mxu0 %vm1375_vm9, %v3554_v2  ;;  %2292 = vmatmul.msk.f32.vlgmr.msra.gmra.mxu1 %vm1375_vm9, %v3554_v2 }
 0x1ca   : > { %v880_v41 = vsel %vm872_vm4, %v855_v23, %v871_v51  ;;  %v888_v46 = vsel %vm872_vm4, %v871_v51, %v855_v23  ;;  %2307 = vmatmul.msk.f32.gmra.mxu2 %vm1375_vm9, %v3692_v49  ;;  %2312 = vmatmul.msk.f32.gmra.mxu3 %vm1375_vm9, %v3692_v49  ;;  %v4166_v51 = vld [vmem:[#allocation49_spill] sm:$0xff] }
 0x1cb   : > { %v1198_v56 = vrot.slane %v880_v41, 4  ;;  %v1199_v14 = vrot.slane %v888_v46, 4 }
 0x1ce   : > { %v487_v38 = vpop.permute.xlu2 %486 }
 0x1d0   : > { %v963_v22 = vpop.permute.xlu0 %962 }
 0x1d1   : > { %v972_v37 = vsel %vm964_vm8, %v947_v53, %v963_v22  ;;  %v980_v44 = vsel %vm964_vm8, %v963_v22, %v947_v53  ;;  %v671_v28 = vpop.permute.xlu1 %670  ;;  %2288 = vmatmul.msk.f32.gmra.mxu0 %vm1375_vm9, %v3668_v12  ;;  %2293 = vmatmul.msk.f32.gmra.mxu1 %vm1375_vm9, %v3668_v12  ;;  %v4167_v22 = vld [vmem:[#allocation48_spill] sm:$0xff] }
 0x1d2   : > { %v1369_v58 = vmul.f32 %v3325_v3, %v972_v37  ;;  %v1370_v34 = vmul.f32 %v3327_v15, %v980_v44  ;;  %v696_v45 = vsel %vm688_vm3, %v671_v28, %v687_v21  ;;  %v704_v27 = vsel %vm688_vm3, %v687_v21, %v671_v28  ;;  %2308 = vmatmul.msk.f32.gmra.mxu2 %vm1375_vm9, %v3716_v47 }
 0x1d3   : > { %v1150_v53 = vrot.slane %v696_v45, 4  ;;  %v1151_v18 = vrot.slane %v704_v27, 4  ;;  %2313 = vmatmul.msk.f32.gmra.mxu3 %vm1375_vm9, %v3716_v47 }
 0x1d4   : > { %2340 = vmatpush.msk.msrb.mxu2 %vm1216_vm2, %v1369_v58  ;;  %2345 = vmatpush.msk.msrb.mxu3 %vm1216_vm2, %v1370_v34 }
 0x1d5   : > { %v1263_v8 = vsel %vm1216_vm2, %v1102_v17, %v1150_v53  ;;  %v1264_v5 = vsel %vm1216_vm2, %v1103_v61, %v1151_v18  ;;  %v1099_v61 = vld.sshfl [vmem:[#allocation1 + $0x20] sm:$0xff pattern:$0x75316420] }
 0x1d6   : > { %v1365_v9 = vmul.f32 %v3363_v39, %v1263_v8  ;;  %v1366_v40 = vmul.f32 %v3376_v7, %v1264_v5  ;;  %v869_v24 = vpop.permute.xlu2 %868 }
 0x1d8   : > { %v763_v59 = vpop.permute.xlu0 %762 }
 0x1d9   : > { %v779_v32 = vpop.permute.xlu1 %778  ;;  %2289 = vmatmul.msk.f32.gmra.mxu0 %vm1375_vm9, %v3692_v49  ;;  %2294 = vmatmul.msk.f32.gmra.mxu1 %vm1375_vm9, %v3692_v49 }
 0x1da   : > { %v788_v11 = vsel %vm780_vm7, %v763_v59, %v779_v32  ;;  %v796_v20 = vsel %vm780_vm7, %v779_v32, %v763_v59 }
 0x1db   : > { %v1279_v4 = vsel %vm1216_vm2, %v788_v11, %v1198_v56  ;;  %v1280_v60 = vsel %vm1216_vm2, %v796_v20, %v1199_v14  ;;  %v1100_v11 = vld.sshfl [vmem:[#allocation1 + $0x28] sm:$0xff pattern:$0x75316420] }
 0x1dc   : > { %v1367_v13 = vmul.f32 %v3347_v6, %v1279_v4  ;;  %v1368_v31 = vmul.f32 %v3352_v54, %v1280_v60 }
 0x1de   : > { %2028 = vmatpush.msrb.mxu2 %v1367_v13  ;;  %2057 = vmatpush.msrb.mxu3 %v1368_v31  ;;  %v669_v44 = vpop.permute.xlu2 %668 }
 0x1e0   : > { %2029 = vmatpush.msrb.mxu2 %v1365_v9  ;;  %2058 = vmatpush.msrb.mxu3 %v1366_v40  ;;  %v595_v42 = vpop.permute.xlu0 %594 }
 0x1e1   : > { %v411_v30 = vpop.permute.xlu1 %410  ;;  %v604_v21 = vsel %vm596_vm5, %v579_v16, %v595_v42  ;;  %v612_v29 = vsel %vm596_vm5, %v595_v42, %v579_v16  ;;  %2290 = vmatmul.msk.f32.gmra.mxu0 %vm1375_vm9, %v3716_v47  ;;  %2295 = vmatmul.msk.f32.gmra.mxu1 %vm1375_vm9, %v3716_v47 }
 0x1e2   : > { %v420_v25 = vsel %vm412_vm1, %v4165_v48, %v411_v30  ;;  %v428_v50 = vsel %vm412_vm1, %v411_v30, %v4165_v48  ;;  %v1059_v57 = vrot.slane %v612_v29, 4  ;;  %v1060_v63 = vrot.slane %v604_v21, 4 }
 0x1e3   : > { %v1011_v0 = vrot.slane %v428_v50, 4  ;;  %v1012_v62 = vrot.slane %v420_v25, 4 }
 0x1e5   : > { %v1231_v16 = vsel %vm1216_vm2, %v4166_v51, %v1011_v0  ;;  %v1232_v37 = vsel %vm1216_vm2, %v4167_v22, %v1012_v62  ;;  %v4170_v51 = vld [vmem:[#allocation43_spill] sm:$0xff] }
 0x1e6   : > { %v1361_v34 = vmul.f32 %v3411_v10, %v1231_v16  ;;  %v1362_v45 = vmul.f32 %v3418_v52, %v1232_v37  ;;  %v777_v53 = vpop.permute.xlu2 %776  ;;  %v1440_v37 = vpop.f32.mrf.mxu1 }
 0x1e8   : > { %v503_v36 = vpop.permute.xlu0 %502 }
 0x1e9   : > { %v512_v19 = vsel %vm504_vm6, %v487_v38, %v503_v36  ;;  %v520_v1 = vsel %vm504_vm6, %v503_v36, %v487_v38  ;;  %v853_v33 = vpop.permute.xlu1 %852 }
 0x1ea   : > { %v1247_v35 = vsel %vm1216_vm2, %v520_v1, %v1059_v57  ;;  %v1248_v23 = vsel %vm1216_vm2, %v512_v19, %v1060_v63  ;;  %v879_v18 = vsel %vm872_vm4, %v853_v33, %v869_v24  ;;  %v887_v59 = vsel %vm872_vm4, %v869_v24, %v853_v33  ;;  %v4169_v19 = vld [vmem:[#allocation44_spill] sm:$0xff]  ;;  %v1411_v33 = vpop.f32.mrf.mxu0 }
 0x1eb   : > { %v1363_v28 = vmul.f32 %v3394_v43, %v1247_v35  ;;  %v1364_v58 = vmul.f32 %v3396_v26, %v1248_v23  ;;  %v1452_v22 = vmul.f32 0.01, %v1411_v33 }
 0x1ed   : > { %2030 = vmatpush.msrb.mxu2 %v1363_v28  ;;  %2059 = vmatpush.msrb.mxu3 %v1364_v58  ;;  %v1460_v55 = vmax.f32 %v1411_v33, %v1452_v22 }
 0x1ee   : > { %v409_v48 = vpop.permute.xlu2 %408 }
 0x1ef   : > { %2031 = vmatpush.msrb.mxu2 %v1361_v34  ;;  %2060 = vmatpush.msrb.mxu3 %v1362_v45  ;;  %v1453_v34 = vmul.f32 0.01, %v1440_v37  ;;  %1468 = vst [vmem:[%s3965_s10] sm:$0xff] %v1460_v55 }
 0x1f0   : > { %v945_v27 = vpop.permute.xlu0 %944  ;;  %2341 = vmatmul.msk.f32.vlgmr.msrb.gmra.mxu2 %vm1375_vm9, %v3554_v2  ;;  %2346 = vmatmul.msk.f32.vlgmr.msrb.gmra.mxu3 %vm1375_vm9, %v3554_v2 }
 0x1f1   : > { %v961_v41 = vpop.permute.xlu1 %960 }
 0x1f2   : > { %v971_v43 = vsel %vm964_vm8, %v945_v27, %v961_v41  ;;  %v979_v26 = vsel %vm964_vm8, %v961_v41, %v945_v27  ;;  %v1528_v27 = vpop.f32.mrf.mxu3  ;;  %v2448_v41 = vld [vmem:[#allocation7 + $0x10] sm:$0xff] }
 0x1f3   : > { %v1359_v46 = vmul.f32 %v3325_v3, %v971_v43  ;;  %v1360_v38 = vmul.f32 %v3327_v15, %v979_v26  ;;  %v1196_v3 = vrot.slane %v879_v18, 4  ;;  %v1197_v15 = vrot.slane %v887_v59, 4  ;;  %v2449_v26 = vld [vmem:[#allocation7 + $0x18] sm:$0xff] }
 0x1f5   : > { %2322 = vmatpush.msk.msrb.mxu0 %vm1216_vm2, %v1359_v46  ;;  %2327 = vmatpush.msk.msrb.mxu1 %vm1216_vm2, %v1360_v38  ;;  %v1541_v38 = vmul.f32 0.01, %v1528_v27 }
 0x1f8   : > { %v685_v17 = vpop.permute.xlu0 %684  ;;  %2342 = vmatmul.msk.f32.gmra.mxu2 %vm1375_vm9, %v3668_v12  ;;  %2347 = vmatmul.msk.f32.gmra.mxu3 %vm1375_vm9, %v3668_v12 }
 0x1f9   : > { %v695_v56 = vsel %vm688_vm3, %v669_v44, %v685_v17  ;;  %v703_v14 = vsel %vm688_vm3, %v685_v17, %v669_v44  ;;  %v761_v32 = vpop.permute.xlu1 %760  ;;  %v1499_v44 = vpop.f32.mrf.mxu2 }
 0x1fa   : > { %v1148_v20 = vrot.slane %v695_v56, 4  ;;  %v1149_v4 = vrot.slane %v703_v14, 4  ;;  %v787_v60 = vsel %vm780_vm7, %v761_v32, %v777_v53  ;;  %v795_v8 = vsel %vm780_vm7, %v777_v53, %v761_v32 }
 0x1fb   : > { %v1277_v5 = vsel %vm1216_vm2, %v787_v60, %v1196_v3  ;;  %v1278_v13 = vsel %vm1216_vm2, %v795_v8, %v1197_v15  ;;  %v1540_v45 = vmul.f32 0.01, %v1499_v44  ;;  %v1461_v53 = vmax.f32 %v1440_v37, %v1453_v34 }
 0x1fc   : > { %v1357_v31 = vmul.f32 %v3347_v6, %v1277_v5  ;;  %v1358_v9 = vmul.f32 %v3352_v54, %v1278_v13  ;;  %v1261_v40 = vsel %vm1216_vm2, %v1099_v61, %v1148_v20  ;;  %v1262_v42 = vsel %vm1216_vm2, %v1100_v11, %v1149_v4  ;;  %v4168_v6 = vld [vmem:[#allocation50_spill] sm:$0xff] }
 0x1fd   : > { %v1355_v24 = vmul.f32 %v3363_v39, %v1261_v40  ;;  %v1356_v30 = vmul.f32 %v3376_v7, %v1262_v42  ;;  %v427_v54 = vsel %vm412_vm1, %v409_v48, %v4168_v6  ;;  %v419_v39 = vsel %vm412_vm1, %v4168_v6, %v409_v48  ;;  %1469 = vst [vmem:[%s3965_s10 + $0x8] sm:$0xff] %v1461_v53 }
 0x1fe   : > { %1939 = vmatpush.msrb.mxu0 %v1357_v31  ;;  %1968 = vmatpush.msrb.mxu1 %v1358_v9  ;;  %v1009_v7 = vrot.slane %v427_v54, 4  ;;  %v1010_v21 = vrot.slane %v419_v39, 4  ;;  %v1548_v18 = vmax.f32 %v1499_v44, %v1540_v45  ;;  %v1549_v61 = vmax.f32 %v1528_v27, %v1541_v38 }
 0x200   : > { %1940 = vmatpush.msrb.mxu0 %v1355_v24  ;;  %1969 = vmatpush.msrb.mxu1 %v1356_v30  ;;  %v577_v25 = vpop.permute.xlu0 %576  ;;  %v1229_v1 = vsel %vm1216_vm2, %v4169_v19, %v1009_v7  ;;  %v1230_v16 = vsel %vm1216_vm2, %v4170_v51, %v1010_v21  ;;  %2242 = vst [vmem:[%s3965_s10 + $0x40] sm:$0xff] %v1548_v18  ;;  %v1443_v3 = vpop.f32.mrf.mxu1 }
 0x201   : > { %v593_v50 = vpop.permute.xlu1 %592  ;;  %2343 = vmatmul.msk.f32.gmra.mxu2 %vm1375_vm9, %v3692_v49  ;;  %2348 = vmatmul.msk.f32.gmra.mxu3 %vm1375_vm9, %v3692_v49  ;;  %v1351_v59 = vmul.f32 %v3411_v10, %v1229_v1  ;;  %v1352_v17 = vmul.f32 %v3418_v52, %v1230_v16  ;;  %2243 = vst [vmem:[%s3965_s10 + $0x48] sm:$0xff] %v1549_v61  ;;  %v1414_v10 = vpop.f32.mrf.mxu0  ;;  %v1455_v15 = vmul.f32 0.01, %v1443_v3 }
 0x202   : > { %v603_v29 = vsel %vm596_vm5, %v577_v25, %v593_v50  ;;  %v611_v0 = vsel %vm596_vm5, %v593_v50, %v577_v25  ;;  %v1454_v52 = vmul.f32 0.01, %v1414_v10 }
 0x203   : > { %v1057_v57 = vrot.slane %v611_v0, 4  ;;  %v1058_v63 = vrot.slane %v603_v29, 4  ;;  %v1463_v14 = vmax.f32 %v1443_v3, %v1455_v15  ;;  %v1502_v32 = vpop.f32.mrf.mxu2 }
 0x204   : > { %v1462_v56 = vmax.f32 %v1414_v10, %v1454_v52  ;;  %v1531_v11 = vpop.f32.mrf.mxu3  ;;  %v1542_v20 = vmul.f32 0.01, %v1502_v32 }
 0x205   : > { %v1543_v4 = vmul.f32 0.01, %v1531_v11  ;;  %1471 = vst [vmem:[%s3965_s10 + $0x18] sm:$0xff] %v1463_v14 }
 0x206   : > { %1470 = vst [vmem:[%s3965_s10 + $0x10] sm:$0xff] %v1462_v56 }
 0x207   : > { %v1551_v60 = vmax.f32 %v1531_v11, %v1543_v4 }
 0x208   : > { %v485_v62 = vpop.permute.xlu0 %484 }
 0x209   : > { %v501_v36 = vpop.permute.xlu1 %500  ;;  %2344 = vmatmul.msk.f32.gmra.mxu2 %vm1375_vm9, %v3716_v47  ;;  %2349 = vmatmul.msk.f32.gmra.mxu3 %vm1375_vm9, %v3716_v47  ;;  %v1417_v8 = vpop.f32.mrf.mxu0  ;;  %2245 = vst [vmem:[%s3965_s10 + $0x58] sm:$0xff] %v1551_v60 }
 0x20a   : > { %v511_v35 = vsel %vm504_vm6, %v485_v62, %v501_v36  ;;  %v519_v23 = vsel %vm504_vm6, %v501_v36, %v485_v62  ;;  %v1456_v5 = vmul.f32 0.01, %v1417_v8  ;;  %v1446_v13 = vpop.f32.mrf.mxu1 }
 0x20b   : > { %v1245_v28 = vsel %vm1216_vm2, %v519_v23, %v1057_v57  ;;  %v1246_v58 = vsel %vm1216_vm2, %v511_v35, %v1058_v63  ;;  %v1457_v31 = vmul.f32 0.01, %v1446_v13  ;;  %v1505_v42 = vpop.f32.mrf.mxu2 }
 0x20c   : > { %v1353_v43 = vmul.f32 %v2448_v41, %v1245_v28  ;;  %v1354_v46 = vmul.f32 %v2449_v26, %v1246_v58  ;;  %v1464_v9 = vmax.f32 %v1417_v8, %v1456_v5  ;;  %v1534_v24 = vpop.f32.mrf.mxu3  ;;  %v1544_v30 = vmul.f32 0.01, %v1505_v42 }
 0x20d   : > { %v1465_v40 = vmax.f32 %v1446_v13, %v1457_v31  ;;  %v1545_v48 = vmul.f32 0.01, %v1534_v24 }
 0x20e   : > { %1941 = vmatpush.msrb.mxu0 %v1353_v43  ;;  %1970 = vmatpush.msrb.mxu1 %v1354_v46  ;;  %1472 = vst [vmem:[%s3965_s10 + $0x20] sm:$0xff] %v1464_v9 }
 0x20f   : > { %1473 = vst [vmem:[%s3965_s10 + $0x28] sm:$0xff] %v1465_v40  ;;  %v1553_v25 = vmax.f32 %v1534_v24, %v1545_v48 }
 0x210   : > { %1942 = vmatpush.msrb.mxu0 %v1351_v59  ;;  %1971 = vmatpush.msrb.mxu1 %v1352_v17 }
 0x211   : > { %2323 = vmatmul.msk.f32.vlgmr.msrb.gmra.mxu0 %vm1375_vm9, %v3554_v2  ;;  %2328 = vmatmul.msk.f32.vlgmr.msrb.gmra.mxu1 %vm1375_vm9, %v3554_v2  ;;  %v1550_v2 = vmax.f32 %v1502_v32, %v1542_v20  ;;  %v1420_v50 = vpop.f32.mrf.mxu0  ;;  %2247 = vst [vmem:[%s3965_s10 + $0x68] sm:$0xff] %v1553_v25 }
 0x212   : > { %v1458_v6 = vmul.f32 0.01, %v1420_v50  ;;  %v1449_v54 = vpop.f32.mrf.mxu1 }
 0x213   : > { %2244 = vst [vmem:[%s3965_s10 + $0x50] sm:$0xff] %v1550_v2  ;;  %v1459_v39 = vmul.f32 0.01, %v1449_v54  ;;  %v1508_v29 = vpop.f32.mrf.mxu2 }
 0x214   : > { %v1466_v7 = vmax.f32 %v1420_v50, %v1458_v6  ;;  %v1537_v0 = vpop.f32.mrf.mxu3  ;;  %v1546_v62 = vmul.f32 0.01, %v1508_v29 }
 0x215   : > { %v1467_v21 = vmax.f32 %v1449_v54, %v1459_v39  ;;  %v1547_v57 = vmul.f32 0.01, %v1537_v0 }
 0x216   : > { %1474 = vst [vmem:[%s3965_s10 + $0x30] sm:$0xff] %v1466_v7 }
 0x217   : > { %1475 = vst [vmem:[%s3965_s10 + $0x38] sm:$0xff] %v1467_v21  ;;  %v1555_v63 = vmax.f32 %v1537_v0, %v1547_v57 }
 0x219   : > { %2324 = vmatmul.msk.f32.gmra.mxu0 %vm1375_vm9, %v3668_v12  ;;  %2329 = vmatmul.msk.f32.gmra.mxu1 %vm1375_vm9, %v3668_v12  ;;  %v1552_v12 = vmax.f32 %v1505_v42, %v1544_v30  ;;  %v1588_v36 = vpop.f32.mrf.mxu0  ;;  %2249 = vst [vmem:[%s3965_s10 + $0x78] sm:$0xff] %v1555_v63 }
 0x21a   : > { %v1629_v19 = vmul.f32 0.01, %v1588_v36  ;;  %v1617_v1 = vpop.f32.mrf.mxu1 }
 0x21b   : > { %2246 = vst [vmem:[%s3965_s10 + $0x60] sm:$0xff] %v1552_v12  ;;  %v1630_v33 = vmul.f32 0.01, %v1617_v1  ;;  %v1677_v51 = vpop.f32.mrf.mxu2 }
 0x21c   : > { %v1637_v35 = vmax.f32 %v1588_v36, %v1629_v19  ;;  %v1706_v16 = vpop.f32.mrf.mxu3  ;;  %v1718_v22 = vmul.f32 0.01, %v1677_v51 }
 0x21d   : > { %v1638_v23 = vmax.f32 %v1617_v1, %v1630_v33 }
 0x21e   : > { %2260 = vst [vmem:[%s3965_s10 + $0x80] sm:$0xff] %v1637_v35  ;;  %v1726_v37 = vmax.f32 %v1677_v51, %v1718_v22 }
 0x21f   : > { %2261 = vst [vmem:[%s3965_s10 + $0x88] sm:$0xff] %v1638_v23 }
 0x220   : > { %2278 = vst [vmem:[%s3965_s10 + $0xc0] sm:$0xff] %v1726_v37 }
 0x221   : > { %2325 = vmatmul.msk.f32.gmra.mxu0 %vm1375_vm9, %v3692_v49  ;;  %2330 = vmatmul.msk.f32.gmra.mxu1 %vm1375_vm9, %v3692_v49  ;;  %v1554_v49 = vmax.f32 %v1508_v29, %v1546_v62  ;;  %v1591_v28 = vpop.f32.mrf.mxu0 }
 0x222   : > { %v1631_v58 = vmul.f32 0.01, %v1591_v28  ;;  %v1620_v34 = vpop.f32.mrf.mxu1 }
 0x223   : > { %2248 = vst [vmem:[%s3965_s10 + $0x70] sm:$0xff] %v1554_v49  ;;  %v1632_v45 = vmul.f32 0.01, %v1620_v34  ;;  %v1680_v43 = vpop.f32.mrf.mxu2 }
 0x224   : > { %v1639_v27 = vmax.f32 %v1591_v28, %v1631_v58  ;;  %v1709_v26 = vpop.f32.mrf.mxu3  ;;  %v1720_v46 = vmul.f32 0.01, %v1680_v43 }
 0x225   : > { %v1640_v41 = vmax.f32 %v1620_v34, %v1632_v45  ;;  %v1721_v55 = vmul.f32 0.01, %v1709_v26 }
 0x226   : > { %2262 = vst [vmem:[%s3965_s10 + $0x90] sm:$0xff] %v1639_v27  ;;  %v1728_v38 = vmax.f32 %v1680_v43, %v1720_v46 }
 0x227   : > { %2263 = vst [vmem:[%s3965_s10 + $0x98] sm:$0xff] %v1640_v41  ;;  %v1729_v53 = vmax.f32 %v1709_v26, %v1721_v55 }
 0x228   : > { %2280 = vst [vmem:[%s3965_s10 + $0xd0] sm:$0xff] %v1728_v38 }
 0x229   : > { %2326 = vmatmul.msk.f32.gmra.mxu0 %vm1375_vm9, %v3716_v47  ;;  %2331 = vmatmul.msk.f32.gmra.mxu1 %vm1375_vm9, %v3716_v47  ;;  %v1719_v47 = vmul.f32 0.01, %v1706_v16  ;;  %v1594_v18 = vpop.f32.mrf.mxu0  ;;  %2281 = vst [vmem:[%s3965_s10 + $0xd8] sm:$0xff] %v1729_v53 }
 0x22a   : > { %v1633_v59 = vmul.f32 0.01, %v1594_v18  ;;  %v1623_v17 = vpop.f32.mrf.mxu1 }
 0x22b   : > { %v1727_v44 = vmax.f32 %v1706_v16, %v1719_v47  ;;  %v1634_v10 = vmul.f32 0.01, %v1623_v17  ;;  %v1683_v52 = vpop.f32.mrf.mxu2 }
 0x22c   : > { %v1641_v61 = vmax.f32 %v1594_v18, %v1633_v59  ;;  %v1712_v3 = vpop.f32.mrf.mxu3  ;;  %v1722_v56 = vmul.f32 0.01, %v1683_v52 }
 0x22d   : > { %2279 = vst [vmem:[%s3965_s10 + $0xc8] sm:$0xff] %v1727_v44  ;;  %v1642_v15 = vmax.f32 %v1623_v17, %v1634_v10  ;;  %v1723_v14 = vmul.f32 0.01, %v1712_v3 }
 0x22e   : > { %2264 = vst [vmem:[%s3965_s10 + $0xa0] sm:$0xff] %v1641_v61  ;;  %v1730_v32 = vmax.f32 %v1683_v52, %v1722_v56 }
 0x22f   : > { %2265 = vst [vmem:[%s3965_s10 + $0xa8] sm:$0xff] %v1642_v15  ;;  %v1731_v11 = vmax.f32 %v1712_v3, %v1723_v14 }
 0x230   : > { %2282 = vst [vmem:[%s3965_s10 + $0xe0] sm:$0xff] %v1730_v32 }
 0x231   : > { %v1597_v20 = vpop.f32.mrf.mxu0  ;;  %2283 = vst [vmem:[%s3965_s10 + $0xe8] sm:$0xff] %v1731_v11 }
 0x232   : > { %v1635_v4 = vmul.f32 0.01, %v1597_v20  ;;  %v1626_v2 = vpop.f32.mrf.mxu1 }
 0x233   : > { %v1636_v8 = vmul.f32 0.01, %v1626_v2  ;;  %v1686_v5 = vpop.f32.mrf.mxu2 }
 0x234   : > { %v1643_v60 = vmax.f32 %v1597_v20, %v1635_v4  ;;  %v1724_v13 = vmul.f32 0.01, %v1686_v5  ;;  %v1715_v31 = vpop.f32.mrf.mxu3 }
 0x235   : > { %v1644_v9 = vmax.f32 %v1626_v2, %v1636_v8  ;;  %v1725_v40 = vmul.f32 0.01, %v1715_v31 }
 0x236   : > { %2266 = vst [vmem:[%s3965_s10 + $0xb0] sm:$0xff] %v1643_v60  ;;  %v1732_v42 = vmax.f32 %v1686_v5, %v1724_v13 }
 0x237   : > { %2267 = vst [vmem:[%s3965_s10 + $0xb8] sm:$0xff] %v1644_v9  ;;  %v1733_v24 = vmax.f32 %v1715_v31, %v1725_v40 }
 0x238   : > { %2284 = vst [vmem:[%s3965_s10 + $0xf0] sm:$0xff] %v1732_v42 }
 0x239   : > { %2285 = vst [vmem:[%s3965_s10 + $0xf8] sm:$0xff] %v1733_v24 }
 0x23b   : > { %v1855_v6 = vpop.f32.mrf.mxu2 }
 0x23c   : > { %v1896_v54 = vmul.f32 0.01, %v1855_v6  ;;  %v1884_v39 = vpop.f32.mrf.mxu3 }
 0x23d   : > { %v1897_v21 = vmul.f32 0.01, %v1884_v39 }
 0x23e   : > { %v1904_v29 = vmax.f32 %v1855_v6, %v1896_v54 }
 0x23f   : > { %v1905_v0 = vmax.f32 %v1884_v39, %v1897_v21 }
 0x240   : > { %2314 = vst [vmem:[%s3965_s10 + $0x140] sm:$0xff] %v1904_v29 }
 0x241   : > { %2315 = vst [vmem:[%s3965_s10 + $0x148] sm:$0xff] %v1905_v0 }
 0x243   : > { %v1858_v19 = vpop.f32.mrf.mxu2 }
 0x244   : > { %v1887_v1 = vpop.f32.mrf.mxu3  ;;  %v1898_v35 = vmul.f32 0.01, %v1858_v19 }
 0x245   : > { %v1899_v23 = vmul.f32 0.01, %v1887_v1 }
 0x246   : > { %v1766_v30 = vpop.f32.mrf.mxu0  ;;  %v1795_v12 = vpop.f32.mrf.mxu1  ;;  %v1906_v51 = vmax.f32 %v1858_v19, %v1898_v35 }
 0x247   : > { %v1807_v48 = vmul.f32 0.01, %v1766_v30  ;;  %v1808_v50 = vmul.f32 0.01, %v1795_v12  ;;  %v1907_v16 = vmax.f32 %v1887_v1, %v1899_v23 }
 0x248   : > { %2316 = vst [vmem:[%s3965_s10 + $0x150] sm:$0xff] %v1906_v51 }
 0x249   : > { %v1815_v25 = vmax.f32 %v1766_v30, %v1807_v48  ;;  %v1816_v7 = vmax.f32 %v1795_v12, %v1808_v50  ;;  %2317 = vst [vmem:[%s3965_s10 + $0x158] sm:$0xff] %v1907_v16 }
 0x24b   : > { %2296 = vst [vmem:[%s3965_s10 + $0x100] sm:$0xff] %v1815_v25 }
 0x24c   : > { %2297 = vst [vmem:[%s3965_s10 + $0x108] sm:$0xff] %v1816_v7 }
 0x24d   : > { %v1861_v58 = vpop.f32.mrf.mxu2  ;;  %v1890_v34 = vpop.f32.mrf.mxu3 }
 0x24e   : > { %v1769_v62 = vpop.f32.mrf.mxu0  ;;  %v1798_v49 = vpop.f32.mrf.mxu1  ;;  %v1900_v27 = vmul.f32 0.01, %v1861_v58  ;;  %v1901_v41 = vmul.f32 0.01, %v1890_v34 }
 0x24f   : > { %v1809_v57 = vmul.f32 0.01, %v1769_v62  ;;  %v1810_v36 = vmul.f32 0.01, %v1798_v49 }
 0x250   : > { %v1908_v43 = vmax.f32 %v1861_v58, %v1900_v27  ;;  %v1909_v26 = vmax.f32 %v1890_v34, %v1901_v41 }
 0x251   : > { %v1817_v63 = vmax.f32 %v1769_v62, %v1809_v57  ;;  %v1818_v33 = vmax.f32 %v1798_v49, %v1810_v36 }
 0x252   : > { %2318 = vst [vmem:[%s3965_s10 + $0x160] sm:$0xff] %v1908_v43 }
 0x253   : > { %2298 = vst [vmem:[%s3965_s10 + $0x110] sm:$0xff] %v1817_v63 }
 0x254   : > { %2299 = vst [vmem:[%s3965_s10 + $0x118] sm:$0xff] %v1818_v33 }
 0x255   : > { %2319 = vst [vmem:[%s3965_s10 + $0x168] sm:$0xff] %v1909_v26  ;;  %v1864_v59 = vpop.f32.mrf.mxu2 }
 0x256   : > { %v1772_v22 = vpop.f32.mrf.mxu0  ;;  %v1801_v37 = vpop.f32.mrf.mxu1  ;;  %v1902_v10 = vmul.f32 0.01, %v1864_v59 }
 0x257   : > { %v1811_v47 = vmul.f32 0.01, %v1772_v22  ;;  %v1812_v28 = vmul.f32 0.01, %v1801_v37  ;;  %v1893_v17 = vpop.f32.mrf.mxu3 }
 0x258   : > { %v1903_v52 = vmul.f32 0.01, %v1893_v17  ;;  %v1910_v3 = vmax.f32 %v1864_v59, %v1902_v10 }
 0x259   : > { %v1819_v44 = vmax.f32 %v1772_v22, %v1811_v47  ;;  %v1820_v45 = vmax.f32 %v1801_v37, %v1812_v28 }
 0x25a   : > { %v1911_v15 = vmax.f32 %v1893_v17, %v1903_v52  ;;  %2320 = vst [vmem:[%s3965_s10 + $0x170] sm:$0xff] %v1910_v3 }
 0x25b   : > { %2300 = vst [vmem:[%s3965_s10 + $0x120] sm:$0xff] %v1819_v44 }
 0x25c   : > { %2301 = vst [vmem:[%s3965_s10 + $0x128] sm:$0xff] %v1820_v45 }
 0x25d   : > { %2321 = vst [vmem:[%s3965_s10 + $0x178] sm:$0xff] %v1911_v15 }
 0x25e   : > { %v1775_v46 = vpop.f32.mrf.mxu0  ;;  %v1804_v38 = vpop.f32.mrf.mxu1 }
 0x25f   : > { %v1813_v55 = vmul.f32 0.01, %v1775_v46  ;;  %v1814_v18 = vmul.f32 0.01, %v1804_v38 }
 0x261   : > { %v1821_v53 = vmax.f32 %v1775_v46, %v1813_v55  ;;  %v1822_v61 = vmax.f32 %v1804_v38, %v1814_v18 }
 0x263   : > { %2302 = vst [vmem:[%s3965_s10 + $0x130] sm:$0xff] %v1821_v53 }
 0x264   : > { %2303 = vst [vmem:[%s3965_s10 + $0x138] sm:$0xff] %v1822_v61 }
 0x273   : > { %v2033_v56 = vpop.f32.mrf.mxu2  ;;  %v2062_v14 = vpop.f32.mrf.mxu3 }
 0x274   : > { %v2074_v32 = vmul.f32 0.01, %v2033_v56  ;;  %v2075_v11 = vmul.f32 0.01, %v2062_v14 }
 0x276   : > { %v2082_v20 = vmax.f32 %v2033_v56, %v2074_v32  ;;  %v2083_v4 = vmax.f32 %v2062_v14, %v2075_v11 }
 0x278   : > { %2350 = vst [vmem:[%s3965_s10 + $0x1c0] sm:$0xff] %v2082_v20 }
 0x279   : > { %2351 = vst [vmem:[%s3965_s10 + $0x1c8] sm:$0xff] %v2083_v4 }
 0x27b   : > { %v2036_v2 = vpop.f32.mrf.mxu2  ;;  %v2065_v60 = vpop.f32.mrf.mxu3 }
 0x27c   : > { %v2076_v8 = vmul.f32 0.01, %v2036_v2  ;;  %v2077_v5 = vmul.f32 0.01, %v2065_v60 }
 0x27e   : > { %v2084_v13 = vmax.f32 %v2036_v2, %v2076_v8  ;;  %v2085_v31 = vmax.f32 %v2065_v60, %v2077_v5 }
 0x280   : > { %2352 = vst [vmem:[%s3965_s10 + $0x1d0] sm:$0xff] %v2084_v13 }
 0x281   : > { %2353 = vst [vmem:[%s3965_s10 + $0x1d8] sm:$0xff] %v2085_v31 }
 0x284   : > { %v2039_v9 = vpop.f32.mrf.mxu2  ;;  %v2068_v40 = vpop.f32.mrf.mxu3 }
 0x285   : > { %v2078_v42 = vmul.f32 0.01, %v2039_v9  ;;  %v2079_v24 = vmul.f32 0.01, %v2068_v40 }
 0x287   : > { %v2086_v30 = vmax.f32 %v2039_v9, %v2078_v42  ;;  %v2087_v48 = vmax.f32 %v2068_v40, %v2079_v24 }
 0x289   : > { %2354 = vst [vmem:[%s3965_s10 + $0x1e0] sm:$0xff] %v2086_v30 }
 0x28a   : > { %2355 = vst [vmem:[%s3965_s10 + $0x1e8] sm:$0xff] %v2087_v48 }
 0x28c   : > { %v2042_v12 = vpop.f32.mrf.mxu2  ;;  %v2071_v25 = vpop.f32.mrf.mxu3 }
 0x28d   : > { %v2080_v50 = vmul.f32 0.01, %v2042_v12  ;;  %v2081_v6 = vmul.f32 0.01, %v2071_v25 }
 0x28e   : > { %v1944_v54 = vpop.f32.mrf.mxu0  ;;  %v1973_v39 = vpop.f32.mrf.mxu1 }
 0x28f   : > { %v1985_v7 = vmul.f32 0.01, %v1944_v54  ;;  %v1986_v21 = vmul.f32 0.01, %v1973_v39  ;;  %v2088_v29 = vmax.f32 %v2042_v12, %v2080_v50  ;;  %v2089_v0 = vmax.f32 %v2071_v25, %v2081_v6 }
 0x291   : > { %v1993_v62 = vmax.f32 %v1944_v54, %v1985_v7  ;;  %v1994_v57 = vmax.f32 %v1973_v39, %v1986_v21  ;;  %2356 = vst [vmem:[%s3965_s10 + $0x1f0] sm:$0xff] %v2088_v29 }
 0x292   : > { %2357 = vst [vmem:[%s3965_s10 + $0x1f8] sm:$0xff] %v2089_v0 }
 0x293   : > { %2332 = vst [vmem:[%s3965_s10 + $0x180] sm:$0xff] %v1993_v62 }
 0x294   : > { %2333 = vst [vmem:[%s3965_s10 + $0x188] sm:$0xff] %v1994_v57 }
 0x296   : > { %v1947_v49 = vpop.f32.mrf.mxu0  ;;  %v1976_v63 = vpop.f32.mrf.mxu1 }
 0x297   : > { %v1987_v36 = vmul.f32 0.01, %v1947_v49  ;;  %v1988_v19 = vmul.f32 0.01, %v1976_v63 }
 0x299   : > { %v1995_v1 = vmax.f32 %v1947_v49, %v1987_v36  ;;  %v1996_v33 = vmax.f32 %v1976_v63, %v1988_v19 }
 0x29b   : > { %2334 = vst [vmem:[%s3965_s10 + $0x190] sm:$0xff] %v1995_v1 }
 0x29c   : > { %2335 = vst [vmem:[%s3965_s10 + $0x198] sm:$0xff] %v1996_v33 }
 0x29e   : > { %v1950_v35 = vpop.f32.mrf.mxu0  ;;  %v1979_v23 = vpop.f32.mrf.mxu1 }
 0x29f   : > { %v1989_v51 = vmul.f32 0.01, %v1950_v35  ;;  %v1990_v16 = vmul.f32 0.01, %v1979_v23 }
 0x2a1   : > { %v1997_v22 = vmax.f32 %v1950_v35, %v1989_v51  ;;  %v1998_v47 = vmax.f32 %v1979_v23, %v1990_v16 }
 0x2a3   : > { %2336 = vst [vmem:[%s3965_s10 + $0x1a0] sm:$0xff] %v1997_v22 }
 0x2a4   : > { %2337 = vst [vmem:[%s3965_s10 + $0x1a8] sm:$0xff] %v1998_v47 }
 0x2a6   : > { %v1953_v37 = vpop.f32.mrf.mxu0  ;;  %v1982_v44 = vpop.f32.mrf.mxu1 }
 0x2a7   : > { %v1991_v28 = vmul.f32 0.01, %v1953_v37  ;;  %v1992_v58 = vmul.f32 0.01, %v1982_v44 }
 0x2a9   : > { %v1999_v34 = vmax.f32 %v1953_v37, %v1991_v28  ;;  %v2000_v45 = vmax.f32 %v1982_v44, %v1992_v58 }
 0x2ab   : > { %2338 = vst [vmem:[%s3965_s10 + $0x1b0] sm:$0xff] %v1999_v34 }
 0x2ac   : > { %2339 = vst [vmem:[%s3965_s10 + $0x1b8] sm:$0xff] %v2000_v45 }
 0x2ad   : > { %2567 = shalt.err (!%p2564_p10)
}
 0x2ae   : > { %s2626_s20 = smov 256  }
 0x2af   : > { %2378 = dma.vmem_to_hbm [thread:$0]  (%p2719_p5), %s2114_s26, 8192, %s2116_s27, %s2100_s16, %s2626_s20, %s2626_s20, %s2619_s23  }
 0x2b0 PF: > { %s2130_s6 = sand.u32 1, %s2598_s12   ;;  %p4171_p12 = scmp.ge.s32.totalorder %s2610_s15, 2 }
 0x2b1   : > { %s2131_s9 = scalar_lea.sflag [#allocation4], %s2130_s6 }
 0x2b2   : > { %p2392_p13 = pnand %p4171_p12, %p2682_p6 }
 0x2b4   : > { %p2393_p0 = pneg %p2392_p13 }
 0x2b6   : > { %2593 = dma.done.wait (%p2393_p0), %s2131_s9, 8192  }
 0x2b7   : > { %2595 = vsyncadd (%p2393_p0), %s2131_s9, 4294959104  ;;  %p17_p3 = scmp.ge.s32.totalorder %s2706_s8, 4   ;;  %s4172_s12 = smov %s2602_s13 }
 0x2b8   : > { %s4173_s13 = smov %s2606_s14  ;;  %s4174_s14 = smov %s2715_s11 }
 0x2b9   : > { %s4175_s15 = smov %s2706_s8  ;;  %19 = sbr.rel (!%p17_p3) target bundleno = 6 (0x6), region = 119 }
 0x2be   :  { %2137 = vsyncpa [#allocation3], 1 }
 0x2bf   :  { %2139 = vsyncpa [#allocation3 + $0x1], 1 }
 0x2c0   :  { %2140 = vsyncpa [#allocation6], 1 }
 0x2c1   :  { %2141 = vsyncpa [#allocation4], 1 }
 0x2c2   :  { %2143 = vsyncpa [#allocation4 + $0x1], 1 }

</bundles_post_ra>
